<compile_context>
chip_gen: v7x
topology: tpu7x:2x2x1
jax: 0.10.0
libtpu: 0.0.40
codegen_flags: <defaults>
</compile_context>

<pallas_src>
import functools

import jax
import jax.numpy as jnp
from jax.experimental import pallas as pl
from jax.experimental.pallas import tpu as pltpu


def _round_up(x, m):
    return ((x + m - 1) // m) * m


# ----------------------------- Pallas kernels ------------------------------

def layer1_kernel(a_ref, x_ref, w1_ref, b1_ref, h_ref):
    """Row tile of GCNConv1 + ReLU:  H_tile = relu((A_tile @ X) @ W1 + b1)."""
    ax = jnp.dot(a_ref[...], x_ref[...], preferred_element_type=jnp.float32)
    h = jnp.dot(ax, w1_ref[...], preferred_element_type=jnp.float32) + b1_ref[...]
    h = jnp.maximum(h, 0.0)
    # TODO(synk): F.dropout(p=0.2) is identity in eval mode; training-mode dropout
    # would use pltpu.prng_seed / pltpu.prng_random_bits here.
    h_ref[...] = h.astype(h_ref.dtype)  # stored to HBM as bf16


def make_layer2_kernel(num_valid_cols):
    def layer2_kernel(a_ref, h_ref, w2_ref, b2_ref, o_ref):
        """Row tile of GCNConv2 + log_softmax over the (lane-padded) class axis."""
        ah = jnp.dot(a_ref[...], h_ref[...], preferred_element_type=jnp.float32)
        logits = (jnp.dot(ah, w2_ref[...], preferred_element_type=jnp.float32)
                  + b2_ref[...])
        # Padded class lanes -> -inf so they vanish from max / sum.
        col = jax.lax.broadcasted_iota(jnp.int32, logits.shape, 1)
        logits = jnp.where(col < num_valid_cols, logits, -jnp.inf)
        m = jnp.max(logits, axis=-1, keepdims=True)
        z = logits - m
        lse = jnp.log(jnp.sum(jnp.exp(z), axis=-1, keepdims=True))
        o_ref[...] = (z - lse).astype(o_ref.dtype)
    return layer2_kernel


# ------------------------------ glue / wrapper ------------------------------

def build_normalized_adjacency(edge_index, num_nodes):
    """Dense D^-1/2 (A + I) D^-1/2, matching PyG gcn_norm with add_self_loops=True."""
    a = jnp.zeros((num_nodes, num_nodes), jnp.float32)
    a = a.at[edge_index[0], edge_index[1]].set(1.0)
    idx = jnp.arange(num_nodes)
    a = a.at[idx, idx].set(1.0)
    deg = jnp.sum(a, axis=1)
    dinv = jnp.where(deg > 0.0, 1.0 / jnp.sqrt(deg), 0.0)
    return dinv[:, None] * a * dinv[None, :]


@functools.partial(jax.jit, static_argnames=("tile_m",))
def gcn_forward(x, edge_index, w1, b1, w2, b2, tile_m=256):
    n, f_in = x.shape
    hid = w1.shape[1]
    out_dim = w2.shape[1]

    # Shrink the row tile if the double-buffered bf16 A tile alone would bust
    # the default scoped VMEM (keeps the same code path valid on v7x's 64 MiB).
    n8 = _round_up(n, 8)
    while tile_m > 8 and 2 * 2 * tile_m * _round_up(n8, tile_m) > 16 * 1024 * 1024:
        tile_m //= 2

    n_pad = _round_up(n, tile_m)
    h_pad = _round_up(max(hid, 128), 128)      # lane-dense hidden width
    o_pad = _round_up(max(out_dim, 128), 128)  # lane-dense output width

    # Normalized adjacency built under the same jit as the kernels (single pass),
    # padded with zero rows/cols (padded nodes contribute nothing) and cast to bf16.
    a = build_normalized_adjacency(edge_index, n)
    a = jnp.pad(a, ((0, n_pad - n), (0, n_pad - n))).astype(jnp.bfloat16)
    x_p = jnp.pad(x, ((0, n_pad - n), (0, 0))).astype(jnp.bfloat16)
    w1_p = jnp.pad(w1.astype(jnp.float32), ((0, 0), (0, h_pad - hid)))
    b1_p = jnp.pad(b1.astype(jnp.float32).reshape(1, -1), ((0, 0), (0, h_pad - hid)))
    w2_p = jnp.pad(w2.astype(jnp.float32), ((0, h_pad - hid), (0, o_pad - out_dim)))
    b2_p = jnp.pad(b2.astype(jnp.float32).reshape(1, -1), ((0, 0), (0, o_pad - out_dim)))

    grid = (n_pad // tile_m,)
    row_parallel = pltpu.CompilerParams(dimension_semantics=("parallel",))
    a_spec = pl.BlockSpec((tile_m, n_pad), lambda i: (i, 0))

    # ---- layer 1: H = relu(A @ X @ W1 + b1), materialized to HBM as bf16 ----
    h_full = pl.pallas_call(
        layer1_kernel,
        out_shape=jax.ShapeDtypeStruct((n_pad, h_pad), jnp.bfloat16),
        grid=grid,
        in_specs=[
            a_spec,
            pl.BlockSpec((n_pad, f_in), lambda i: (0, 0)),   # X, VMEM-resident
            pl.BlockSpec((f_in, h_pad), lambda i: (0, 0)),   # W1, VMEM-resident
            pl.BlockSpec((1, h_pad), lambda i: (0, 0)),      # b1, VMEM-resident
        ],
        out_specs=pl.BlockSpec((tile_m, h_pad), lambda i: (i, 0)),
        compiler_params=row_parallel,
        cost_estimate=pl.CostEstimate(
            flops=2 * n_pad * n_pad * f_in + 2 * n_pad * f_in * h_pad,
            transcendentals=0,
            bytes_accessed=2 * n_pad * n_pad + 2 * n_pad * f_in
            + 4 * f_in * h_pad + 2 * n_pad * h_pad),
    )(a, x_p, w1_p, b1_p)

    # ---- layer 2: log_softmax(A @ H @ W2 + b2) over lane-padded classes ----
    out_pad = pl.pallas_call(
        make_layer2_kernel(out_dim),
        out_shape=jax.ShapeDtypeStruct((n_pad, o_pad), jnp.float32),
        grid=grid,
        in_specs=[
            a_spec,
            pl.BlockSpec((n_pad, h_pad), lambda i: (0, 0)),  # H, VMEM-resident
            pl.BlockSpec((h_pad, o_pad), lambda i: (0, 0)),  # W2, VMEM-resident
            pl.BlockSpec((1, o_pad), lambda i: (0, 0)),      # b2, VMEM-resident
        ],
        out_specs=pl.BlockSpec((tile_m, o_pad), lambda i: (i, 0)),
        compiler_params=row_parallel,
        cost_estimate=pl.CostEstimate(
            flops=2 * n_pad * n_pad * h_pad + 2 * n_pad * h_pad * o_pad,
            transcendentals=n_pad * o_pad,
            bytes_accessed=2 * n_pad * n_pad + 2 * n_pad * h_pad
            + 4 * h_pad * o_pad + 4 * n_pad * o_pad),
    )(a, h_full, w2_p, b2_p)

    return out_pad[:n, :out_dim]


# ---------------------------------- demo ------------------------------------

if __name__ == "__main__":
    # Small deterministic problem: N nodes on an undirected ring.
    N, F_IN, HID, OUT = 16, 8, 32, 4

    key = jax.random.PRNGKey(0)
    kx, kw1, kw2 = jax.random.split(key, 3)

    x = jax.random.normal(kx, (N, F_IN), jnp.float32)

    src = jnp.arange(N, dtype=jnp.int32)
    dst = (src + 1) % N
    edge_index = jnp.stack(
        [jnp.concatenate([src, dst]), jnp.concatenate([dst, src])], axis=0
    )  # [2, 2N]

    # Glorot-ish weights, zero bias (PyG default-like), deterministic.
    w1 = jax.random.normal(kw1, (F_IN, HID), jnp.float32) * (1.0 / jnp.sqrt(F_IN))
    b1 = jnp.zeros((HID,), jnp.float32)
    w2 = jax.random.normal(kw2, (HID, OUT), jnp.float32) * (1.0 / jnp.sqrt(HID))
    b2 = jnp.zeros((OUT,), jnp.float32)

    out = gcn_forward(x, edge_index, w1, b1, w2, b2)
    out = jax.block_until_ready(out)

    # Pure-JAX reference mirroring the kernel's bf16 MXU operands (A, X, H) with
    # f32 accumulation; equals the PyG forward up to bf16 rounding of those tensors.
    a_norm = build_normalized_adjacency(edge_index, N)
    a_bf = a_norm.astype(jnp.bfloat16).astype(jnp.float32)
    x_bf = x.astype(jnp.bfloat16).astype(jnp.float32)
    hp = jax.lax.Precision.HIGHEST
    h_ref = jnp.maximum(
        jnp.dot(jnp.dot(a_bf, x_bf, precision=hp), w1, precision=hp) + b1, 0.0)
    h_bf = h_ref.astype(jnp.bfloat16).astype(jnp.float32)
    o_ref = jnp.dot(jnp.dot(a_bf, h_bf, precision=hp), w2, precision=hp) + b2
    ref = jax.nn.log_softmax(o_ref, axis=-1)

    assert out.shape == (N, OUT)
    assert jnp.allclose(out, ref, atol=5e-3, rtol=5e-3), "mismatch vs reference"

    print("KERNEL_OK")
</pallas_src>

<mosaic_0001>
module attributes {stable_mosaic.version = 11 : i64} {
  func.func @layer1_kernel(%arg0: i32, %arg1: memref<256x256xbf16, #tpu.memory_space<vmem>>, %arg2: memref<256x8xbf16, #tpu.memory_space<vmem>>, %arg3: memref<8x128xf32, #tpu.memory_space<vmem>>, %arg4: memref<1x128xf32, #tpu.memory_space<vmem>>, %arg5: memref<256x128xbf16, #tpu.memory_space<vmem>>) attributes {dimension_semantics = [#tpu.dimension_semantics<parallel>], iteration_bounds = array<i64: 1>, scalar_prefetch = 0 : i64, scratch_operands = 0 : i64, tpu.core_type = #tpu.core_type<tc>, window_params = [{transform_indices = @transform_0, window_bounds = array<i64: 256, 256>}, {pipeline_mode = #tpu.pipeline_mode<synchronous>, transform_indices = @transform_1, window_bounds = array<i64: 256, 8>}, {pipeline_mode = #tpu.pipeline_mode<synchronous>, transform_indices = @transform_2, window_bounds = array<i64: 8, 128>}, {pipeline_mode = #tpu.pipeline_mode<synchronous>, transform_indices = @transform_3, window_bounds = array<i64: 1, 128>}, {transform_indices = @transform_4, window_bounds = array<i64: 256, 128>}]} {
    %c0 = arith.constant 0 : index
    %c0_0 = arith.constant 0 : index
    %0 = vector.load %arg1[%c0, %c0_0] : memref<256x256xbf16, #tpu.memory_space<vmem>>, vector<256x256xbf16>
    %c0_1 = arith.constant 0 : index
    %c0_2 = arith.constant 0 : index
    %1 = vector.load %arg2[%c0_1, %c0_2] : memref<256x8xbf16, #tpu.memory_space<vmem>>, vector<256x8xbf16>
    %cst = arith.constant dense<0.000000e+00> : vector<256x8xf32>
    %2 = tpu.matmul %0, %1, %cst {dimension_numbers = #tpu.dot_dimension_numbers<[1], [0], [0], [1], [0, 0, 1, 1], [], []>} : vector<256x256xbf16>, vector<256x8xbf16>, vector<256x8xf32> -> vector<256x8xf32>
    %c0_3 = arith.constant 0 : index
    %c0_4 = arith.constant 0 : index
    %3 = vector.load %arg3[%c0_3, %c0_4] : memref<8x128xf32, #tpu.memory_space<vmem>>, vector<8x128xf32>
    %cst_5 = arith.constant dense<0.000000e+00> : vector<256x128xf32>
    %4 = tpu.matmul %2, %3, %cst_5 {dimension_numbers = #tpu.dot_dimension_numbers<[1], [0], [0], [1], [0, 0, 1, 1], [], []>} : vector<256x8xf32>, vector<8x128xf32>, vector<256x128xf32> -> vector<256x128xf32>
    %c0_6 = arith.constant 0 : index
    %c0_7 = arith.constant 0 : index
    %5 = vector.load %arg4[%c0_6, %c0_7] : memref<1x128xf32, #tpu.memory_space<vmem>>, vector<1x128xf32>
    %6 = vector.broadcast %5 : vector<1x128xf32> to vector<256x128xf32>
    %7 = arith.addf %4, %6 : vector<256x128xf32>
    %cst_8 = arith.constant 0.000000e+00 : f32
    %8 = vector.broadcast %cst_8 : f32 to vector<256x128xf32>
    %9 = arith.maximumf %7, %8 : vector<256x128xf32>
    %10 = arith.truncf %9 : vector<256x128xf32> to vector<256x128xbf16>
    %c0_9 = arith.constant 0 : index
    %c0_10 = arith.constant 0 : index
    %11 = vector.load %arg5[%c0_9, %c0_10] : memref<256x128xbf16, #tpu.memory_space<vmem>>, vector<256x128xbf16>
    tpu.vector_store %arg5[%c0_9, %c0_10], %10 {strides = array<i32>} : memref<256x128xbf16, #tpu.memory_space<vmem>>, vector<256x128xbf16>,
    return
  }
  func.func @transform_0(%arg0: i32) -> (i32, i32) {
    %c0_i32 = arith.constant 0 : i32
    %c0_i32_0 = arith.constant 0 : i32
    return %arg0, %c0_i32 : i32, i32
  }
  func.func @transform_1(%arg0: i32) -> (i32, i32) {
    %c0_i32 = arith.constant 0 : i32
    %c0_i32_0 = arith.constant 0 : i32
    %c0_i32_1 = arith.constant 0 : i32
    return %c0_i32, %c0_i32_0 : i32, i32
  }
  func.func @transform_2(%arg0: i32) -> (i32, i32) {
    %c0_i32 = arith.constant 0 : i32
    %c0_i32_0 = arith.constant 0 : i32
    %c0_i32_1 = arith.constant 0 : i32
    return %c0_i32, %c0_i32_0 : i32, i32
  }
  func.func @transform_3(%arg0: i32) -> (i32, i32) {
    %c0_i32 = arith.constant 0 : i32
    %c0_i32_0 = arith.constant 0 : i32
    %c0_i32_1 = arith.constant 0 : i32
    return %c0_i32, %c0_i32_0 : i32, i32
  }
  func.func @transform_4(%arg0: i32) -> (i32, i32) {
    %c0_i32 = arith.constant 0 : i32
    %c0_i32_0 = arith.constant 0 : i32
    return %arg0, %c0_i32 : i32, i32
  }
}

module attributes {stable_mosaic.version = 11 : i64} {
  func.func @layer2_kernel(%arg0: i32, %arg1: memref<256x256xbf16, #tpu.memory_space<vmem>>, %arg2: memref<256x128xbf16, #tpu.memory_space<vmem>>, %arg3: memref<128x128xf32, #tpu.memory_space<vmem>>, %arg4: memref<1x128xf32, #tpu.memory_space<vmem>>, %arg5: memref<256x128xf32, #tpu.memory_space<vmem>>) attributes {dimension_semantics = [#tpu.dimension_semantics<parallel>], iteration_bounds = array<i64: 1>, scalar_prefetch = 0 : i64, scratch_operands = 0 : i64, tpu.core_type = #tpu.core_type<tc>, window_params = [{transform_indices = @transform_0, window_bounds = array<i64: 256, 256>}, {pipeline_mode = #tpu.pipeline_mode<synchronous>, transform_indices = @transform_1, window_bounds = array<i64: 256, 128>}, {pipeline_mode = #tpu.pipeline_mode<synchronous>, transform_indices = @transform_2, window_bounds = array<i64: 128, 128>}, {pipeline_mode = #tpu.pipeline_mode<synchronous>, transform_indices = @transform_3, window_bounds = array<i64: 1, 128>}, {transform_indices = @transform_4, window_bounds = array<i64: 256, 128>}]} {
    %c0 = arith.constant 0 : index
    %c0_0 = arith.constant 0 : index
    %0 = vector.load %arg1[%c0, %c0_0] : memref<256x256xbf16, #tpu.memory_space<vmem>>, vector<256x256xbf16>
    %c0_1 = arith.constant 0 : index
    %c0_2 = arith.constant 0 : index
    %1 = vector.load %arg2[%c0_1, %c0_2] : memref<256x128xbf16, #tpu.memory_space<vmem>>, vector<256x128xbf16>
    %cst = arith.constant dense<0.000000e+00> : vector<256x128xf32>
    %2 = tpu.matmul %0, %1, %cst {dimension_numbers = #tpu.dot_dimension_numbers<[1], [0], [0], [1], [0, 0, 1, 1], [], []>} : vector<256x256xbf16>, vector<256x128xbf16>, vector<256x128xf32> -> vector<256x128xf32>
    %c0_3 = arith.constant 0 : index
    %c0_4 = arith.constant 0 : index
    %3 = vector.load %arg3[%c0_3, %c0_4] : memref<128x128xf32, #tpu.memory_space<vmem>>, vector<128x128xf32>
    %cst_5 = arith.constant dense<0.000000e+00> : vector<256x128xf32>
    %4 = tpu.matmul %2, %3, %cst_5 {dimension_numbers = #tpu.dot_dimension_numbers<[1], [0], [0], [1], [0, 0, 1, 1], [], []>} : vector<256x128xf32>, vector<128x128xf32>, vector<256x128xf32> -> vector<256x128xf32>
    %c0_6 = arith.constant 0 : index
    %c0_7 = arith.constant 0 : index
    %5 = vector.load %arg4[%c0_6, %c0_7] : memref<1x128xf32, #tpu.memory_space<vmem>>, vector<1x128xf32>
    %6 = vector.broadcast %5 : vector<1x128xf32> to vector<256x128xf32>
    %7 = arith.addf %4, %6 : vector<256x128xf32>
    %8 = tpu.iota {dimensions = array<i32: 1>} : vector<256x128xi32>
    %c4_i32 = arith.constant 4 : i32
    %9 = vector.broadcast %c4_i32 : i32 to vector<256x128xi32>
    %10 = arith.cmpi slt, %8, %9 : vector<256x128xi32>
    %cst_8 = arith.constant 0xFF800000 : f32
    %11 = vector.broadcast %cst_8 : f32 to vector<256x128xf32>
    %12 = arith.select %10, %7, %11 : vector<256x128xi1>, vector<256x128xf32>
    %cst_9 = arith.constant dense<0xFF800000> : vector<256xf32>
    %13 = vector.multi_reduction <maximumf>, %12, %cst_9 [1] : vector<256x128xf32> to vector<256xf32>
    %14 = vector.shape_cast %13 : vector<256xf32> to vector<256x1xf32>
    %15 = vector.broadcast %14 : vector<256x1xf32> to vector<256x128xf32>
    %16 = arith.subf %12, %15 : vector<256x128xf32>
    %17 = math.exp %16 : vector<256x128xf32>
    %cst_10 = arith.constant dense<0.000000e+00> : vector<256xf32>
    %18 = vector.multi_reduction <add>, %17, %cst_10 [1] : vector<256x128xf32> to vector<256xf32>
    %19 = vector.shape_cast %18 : vector<256xf32> to vector<256x1xf32>
    %20 = math.log %19 : vector<256x1xf32>
    %21 = vector.broadcast %20 : vector<256x1xf32> to vector<256x128xf32>
    %22 = arith.subf %16, %21 : vector<256x128xf32>
    %c0_11 = arith.constant 0 : index
    %c0_12 = arith.constant 0 : index
    %23 = vector.load %arg5[%c0_11, %c0_12] : memref<256x128xf32, #tpu.memory_space<vmem>>, vector<256x128xf32>
    tpu.vector_store %arg5[%c0_11, %c0_12], %22 {strides = array<i32>} : memref<256x128xf32, #tpu.memory_space<vmem>>, vector<256x128xf32>,
    return
  }
  func.func @transform_0(%arg0: i32) -> (i32, i32) {
    %c0_i32 = arith.constant 0 : i32
    %c0_i32_0 = arith.constant 0 : i32
    return %arg0, %c0_i32 : i32, i32
  }
  func.func @transform_1(%arg0: i32) -> (i32, i32) {
    %c0_i32 = arith.constant 0 : i32
    %c0_i32_0 = arith.constant 0 : i32
    %c0_i32_1 = arith.constant 0 : i32
    return %c0_i32, %c0_i32_0 : i32, i32
  }
  func.func @transform_2(%arg0: i32) -> (i32, i32) {
    %c0_i32 = arith.constant 0 : i32
    %c0_i32_0 = arith.constant 0 : i32
    %c0_i32_1 = arith.constant 0 : i32
    return %c0_i32, %c0_i32_0 : i32, i32
  }
  func.func @transform_3(%arg0: i32) -> (i32, i32) {
    %c0_i32 = arith.constant 0 : i32
    %c0_i32_0 = arith.constant 0 : i32
    %c0_i32_1 = arith.constant 0 : i32
    return %c0_i32, %c0_i32_0 : i32, i32
  }
  func.func @transform_4(%arg0: i32) -> (i32, i32) {
    %c0_i32 = arith.constant 0 : i32
    %c0_i32_0 = arith.constant 0 : i32
    return %arg0, %c0_i32 : i32, i32
  }
}

</mosaic_0001>

<bundles_post_ra>
// kernel: gcn_forward.2
= control target key start
LH: loop header
LB: loop body
LE: loop exit
PB: predicated region body
PF: predicated region fallthrough
CT: control target
= control target key end

     0   :  { %vm507_vm0 = vcmask 64512   ;;  %s1853_s1 = inlined_call_operand.vmem [shape: bf16[256,8], index: 1, kind: input, shape index: {}]   ;;  %s1854_s0 = inlined_call_operand.vmem [shape: bf16[256,256], index: 0, kind: input, shape index: {}]   ;;  %s1855_s2 = inlined_call_operand.vmem [shape: f32[8,128], index: 2, kind: input, shape index: {}]   ;;  %s1856_s3 = inlined_call_operand.vmem [shape: f32[1,128], index: 3, kind: input, shape index: {}]   ;;  %s1857_s4 = inlined_call_operand.vmem [shape: bf16[256,128], index: 4, kind: output, shape index: {}]  }
   0x1   :  { %v1476_v0 = vld [vmem:[%s1853_s1 + $0x40] sm:$0xff]   ;;  %v1478_v2 = vld [vmem:[%s1853_s1 + $0x48] sm:$0xff]   ;;  %v1480_v4 = vld [vmem:[%s1853_s1 + $0x50] sm:$0xff]  }
   0x2   :  { %v1477_v1 = vld [vmem:[%s1853_s1] sm:$0xff]   ;;  %1265 = vmatprep.subr.bf16.mxu0 %v1476_v0  ;;  %1460 = vmatprep.subr.bf16.mxu1 %v1476_v0  ;;  %v1479_v3 = vld [vmem:[%s1853_s1 + $0x8] sm:$0xff]   ;;  %v1481_v5 = vld [vmem:[%s1853_s1 + $0x10] sm:$0xff]  }
   0x3   :  { %1266 = vmatpush3.bf16.msra.mxu0 %v1477_v1  ;;  %1468 = vmatpush3.bf16.msra.mxu1 %v1477_v1  ;;  %v1482_v6 = vld [vmem:[%s1853_s1 + $0x58] sm:$0xff]   ;;  %v1484_v8 = vld [vmem:[%s1853_s1 + $0x60] sm:$0xff]   ;;  %v1486_v10 = vld [vmem:[%s1853_s1 + $0x68] sm:$0xff]  }
   0x4   :  { %1267 = vmatprep.subr.bf16.mxu0 %v1478_v2  ;;  %1461 = vmatprep.subr.bf16.mxu1 %v1478_v2  ;;  %v1483_v7 = vld [vmem:[%s1853_s1 + $0x18] sm:$0xff]   ;;  %v1485_v9 = vld [vmem:[%s1853_s1 + $0x20] sm:$0xff]   ;;  %v1487_v12 = vld [vmem:[%s1853_s1 + $0x28] sm:$0xff]  }
   0x5   :  { %v1494_v11 = vld [vmem:[%s1854_s0 + $0x4] ss:$8 sps:$4 sm:$0xff]   ;;  %v1488_v13 = vld [vmem:[%s1853_s1 + $0x70] sm:$0xff]   ;;  %v1490_v15 = vld [vmem:[%s1853_s1 + $0x78] sm:$0xff]  }
   0x6   :  { %370 = vmatprep.mubr.bf16.mxu0 %v1494_v11  ;;  %v1489_v14 = vld [vmem:[%s1853_s1 + $0x30] sm:$0xff]   ;;  %v1491_v16 = vld [vmem:[%s1853_s1 + $0x38] sm:$0xff]   ;;  %v1492_v17 = vld [vmem:[%s1854_s0] ss:$8 sps:$4 sm:$0xff]  }
   0x7   :  { %1268 = vmatpush3.bf16.msra.mxu0 %v1479_v3  ;;  %1469 = vmatpush3.bf16.msra.mxu1 %v1479_v3  ;;  %v1524_v18 = vld [vmem:[%s1854_s0 + $0xc4] ss:$8 sps:$4 sm:$0xff]   ;;  %v1495_v19 = vld [vmem:[%s1854_s0 + $0x14] ss:$8 sps:$4 sm:$0xff]   ;;  %v1522_v20 = vld [vmem:[%s1854_s0 + $0xc0] ss:$8 sps:$4 sm:$0xff]  }
   0x8   :  { %1269 = vmatprep.subr.bf16.mxu0 %v1480_v4  ;;  %1462 = vmatprep.subr.bf16.mxu1 %v1480_v4  ;;  %v1528_v21 = vld [vmem:[%s1854_s0 + $0xd4] ss:$8 sps:$4 sm:$0xff]   ;;  %v1497_v22 = vld [vmem:[%s1854_s0 + $0x10] ss:$8 sps:$4 sm:$0xff]   ;;  %v1498_v23 = vld [vmem:[%s1854_s0 + $0x24] ss:$8 sps:$4 sm:$0xff]  }
   0x9   :  { %466 = vmatprep.mubr.bf16.mxu1 %v1524_v18  ;;  %v1530_v24 = vld [vmem:[%s1854_s0 + $0xd0] ss:$8 sps:$4 sm:$0xff]   ;;  %v1534_v25 = vld [vmem:[%s1854_s0 + $0xe4] ss:$8 sps:$4 sm:$0xff]   ;;  %v1500_v26 = vld [vmem:[%s1854_s0 + $0x20] ss:$8 sps:$4 sm:$0xff]  }
   0xa   :  { %v1501_v27 = vld [vmem:[%s1854_s0 + $0x34] ss:$8 sps:$4 sm:$0xff]   ;;  %v1536_v28 = vld [vmem:[%s1854_s0 + $0xe0] ss:$8 sps:$4 sm:$0xff]   ;;  %v1503_v30 = vld [vmem:[%s1854_s0 + $0x30] ss:$8 sps:$4 sm:$0xff]  }
   0xb   :  { %1270 = vmatpush3.bf16.msra.mxu0 %v1481_v5  ;;  %1470 = vmatpush3.bf16.msra.mxu1 %v1481_v5  ;;  %v1537_v29 = vld [vmem:[%s1854_s0 + $0xf4] ss:$8 sps:$4 sm:$0xff]   ;;  %v1504_v31 = vld [vmem:[%s1854_s0 + $0x44] ss:$8 sps:$4 sm:$0xff]   ;;  %v1539_v32 = vld [vmem:[%s1854_s0 + $0xf0] ss:$8 sps:$4 sm:$0xff]  }
   0xc   :  { %1271 = vmatprep.subr.bf16.mxu0 %v1482_v6  ;;  %1463 = vmatprep.subr.bf16.mxu1 %v1482_v6  ;;  %v1506_v33 = vld [vmem:[%s1854_s0 + $0x40] ss:$8 sps:$4 sm:$0xff]   ;;  %v1507_v34 = vld [vmem:[%s1854_s0 + $0x54] ss:$8 sps:$4 sm:$0xff]   ;;  %v1509_v35 = vld [vmem:[%s1854_s0 + $0x50] ss:$8 sps:$4 sm:$0xff]  }
   0xd   :  { %v1510_v36 = vld [vmem:[%s1854_s0 + $0x64] ss:$8 sps:$4 sm:$0xff]   ;;  %v1512_v37 = vld [vmem:[%s1854_s0 + $0x60] ss:$8 sps:$4 sm:$0xff]   ;;  %v1513_v38 = vld [vmem:[%s1854_s0 + $0x74] ss:$8 sps:$4 sm:$0xff]  }
   0xe   :  { %v1515_v39 = vld [vmem:[%s1854_s0 + $0x70] ss:$8 sps:$4 sm:$0xff]   ;;  %v1516_v40 = vld [vmem:[%s1854_s0 + $0x84] ss:$8 sps:$4 sm:$0xff]   ;;  %v1518_v41 = vld [vmem:[%s1854_s0 + $0x80] ss:$8 sps:$4 sm:$0xff]  }
   0xf   :  { %1272 = vmatpush3.bf16.msra.mxu0 %v1483_v7  ;;  %1471 = vmatpush3.bf16.msra.mxu1 %v1483_v7  ;;  %v1519_v42 = vld [vmem:[%s1854_s0 + $0x94] ss:$8 sps:$4 sm:$0xff]   ;;  %v1521_v43 = vld [vmem:[%s1854_s0 + $0x90] ss:$8 sps:$4 sm:$0xff]   ;;  %v1525_v44 = vld [vmem:[%s1854_s0 + $0xa4] ss:$8 sps:$4 sm:$0xff]  }
  0x10   :  { %1273 = vmatprep.subr.bf16.mxu0 %v1484_v8  ;;  %1464 = vmatprep.subr.bf16.mxu1 %v1484_v8  ;;  %v1527_v45 = vld [vmem:[%s1854_s0 + $0xa0] ss:$8 sps:$4 sm:$0xff]   ;;  %v1531_v46 = vld [vmem:[%s1854_s0 + $0xb4] ss:$8 sps:$4 sm:$0xff]   ;;  %v1533_v47 = vld [vmem:[%s1854_s0 + $0xb0] ss:$8 sps:$4 sm:$0xff]  }
  0x11   :  { %v499_v48 = vld [vmem:[%s1855_s2] sm:$0xff] }
  0x13   :  { %1274 = vmatpush3.bf16.msra.mxu0 %v1485_v9  ;;  %1472 = vmatpush3.bf16.msra.mxu1 %v1485_v9 }
  0x14   :  { %1275 = vmatprep.subr.bf16.mxu0 %v1486_v10  ;;  %1465 = vmatprep.subr.bf16.mxu1 %v1486_v10 }
  0x17   :  { %1276 = vmatpush3.bf16.msra.mxu0 %v1487_v12  ;;  %1473 = vmatpush3.bf16.msra.mxu1 %v1487_v12 }
  0x18   :  { %1277 = vmatprep.subr.bf16.mxu0 %v1488_v13  ;;  %1466 = vmatprep.subr.bf16.mxu1 %v1488_v13 }
  0x1b   :  { %1278 = vmatpush3.bf16.msra.mxu0 %v1489_v14  ;;  %1474 = vmatpush3.bf16.msra.mxu1 %v1489_v14 }
  0x1c   :  { %1279 = vmatprep.subr.bf16.mxu0 %v1490_v15  ;;  %1467 = vmatprep.subr.bf16.mxu1 %v1490_v15 }
  0x1f   :  { %1280 = vmatpush3.bf16.msra.mxu0 %v1491_v16  ;;  %1475 = vmatpush3.bf16.msra.mxu1 %v1491_v16 }
  0x20   :  { %1410 = vmatprep.subr.mxu1 %v499_v48 }
  0x22   :  { %371 = vmatmul.mubr.bf16.vlgmr.msra.gmra.mrb[0].mxu0 %v1492_v17  ;;  %467 = vmatmul.mubr.bf16.vlgmr.msra.gmra.mrb[0].mxu1 %v1522_v20 }
  0x23   :  { %378 = vmatprep.mubr.bf16.mxu0 %v1495_v19  ;;  %474 = vmatprep.mubr.bf16.mxu1 %v1528_v21 }
  0x24   :  { %1411 = vmatpush3.msra.mxu1 %v499_v48 }
  0x2a   :  { %379 = vmatmul.mubr.bf16.gmra.mrb[4].mxu0 %v1497_v22  ;;  %475 = vmatmul.mubr.bf16.gmra.mrb[4].mxu1 %v1530_v24 }
  0x2b   :  { %386 = vmatprep.mubr.bf16.mxu0 %v1498_v23  ;;  %482 = vmatprep.mubr.bf16.mxu1 %v1534_v25 }
  0x32   :  { %387 = vmatmul.mubr.bf16.gmra.mrb[8].mxu0 %v1500_v26  ;;  %483 = vmatmul.mubr.bf16.gmra.mrb[8].mxu1 %v1536_v28 }
  0x33   :  { %394 = vmatprep.mubr.bf16.mxu0 %v1501_v27  ;;  %490 = vmatprep.mubr.bf16.mxu1 %v1537_v29 }
  0x3a   :  { %395 = vmatmul.mubr.bf16.gmra.mrb[12].mxu0 %v1503_v30  ;;  %491 = vmatmul.mubr.bf16.gmra.mrb[12].mxu1 %v1539_v32 }
  0x3b   :  { %402 = vmatprep.mubr.bf16.mxu0 %v1504_v31 }
  0x42   :  { %403 = vmatmul.mubr.bf16.gmra.mrb[16].mxu0 %v1506_v33 }
  0x43   :  { %410 = vmatprep.mubr.bf16.mxu0 %v1507_v34 }
  0x4a   :  { %411 = vmatmul.mubr.bf16.gmra.mrb[20].mxu0 %v1509_v35 }
  0x4b   :  { %418 = vmatprep.mubr.bf16.mxu0 %v1510_v36 }
  0x52   :  { %419 = vmatmul.mubr.bf16.gmra.mrb[24].mxu0 %v1512_v37 }
  0x53   :  { %426 = vmatprep.mubr.bf16.mxu0 %v1513_v38 }
  0x5a   :  { %427 = vmatmul.mubr.bf16.gmra.mrb[28].mxu0 %v1515_v39 }
  0x5b   :  { %434 = vmatprep.mubr.bf16.mxu0 %v1516_v40 }
  0x62   :  { %435 = vmatmul.mubr.bf16.gmra.mrb[32].mxu0 %v1518_v41 }
  0x63   :  { %442 = vmatprep.mubr.bf16.mxu0 %v1519_v42 }
  0x6a   :  { %443 = vmatmul.mubr.bf16.gmra.mrb[36].mxu0 %v1521_v43 }
  0x6b   :  { %450 = vmatprep.mubr.bf16.mxu0 %v1525_v44 }
  0x72   :  { %451 = vmatmul.mubr.bf16.gmra.mrb[40].mxu0 %v1527_v45 }
  0x73   :  { %458 = vmatprep.mubr.bf16.mxu0 %v1531_v46 }
  0x7a   :  { %459 = vmatmul.mubr.bf16.gmra.mrb[44].mxu0 %v1533_v47 }
  0xf5   :  { %v1281_v49 = vpop.f32.mrb[0].mxu0  ;;  %v1353_v51 = vpop.f32.mrb[0].mxu1 }
  0xf6   :  { %v1282_v50 = vpop.f32.mrb[1].mxu0  ;;  %v1354_v54 = vpop.f32.mrb[1].mxu1 }
  0xf7   :  { %v1283_v52 = vadd.f32 %v1282_v50, %v1281_v49  ;;  %v1284_v53 = vpop.f32.mrb[2].mxu0  ;;  %v1712_v56 = vadd.f32 %v1354_v54, %v1353_v51  ;;  %v1356_v57 = vpop.f32.mrb[2].mxu1 }
  0xf8   :  { %v1285_v55 = vpop.f32.mrb[3].mxu0  ;;  %v1357_v59 = vpop.f32.mrb[3].mxu1 }
  0xf9   :  { %v1286_v58 = vadd.f32 %v1285_v55, %v1284_v53  ;;  %1412 = vmatprep.mubr.msk.f32.mxu1 %vm507_vm0, %v1283_v52  ;;  %v1715_v60 = vadd.f32 %v1357_v59, %v1356_v57 }
  0xfb   :  { %1413 = vmatmul.mubr.msk.f32.vlgmr.msra.gmra.mrb[16].mxu1 %vm507_vm0, %v1286_v58 }
  0xfd   :  { %v1287_v61 = vpop.f32.mrb[4].mxu0  ;;  %v1359_v63 = vpop.f32.mrb[4].mxu1 }
  0xfe   :  { %v1288_v62 = vpop.f32.mrb[5].mxu0  ;;  %v1360_v2 = vpop.f32.mrb[5].mxu1 }
  0xff   :  { %v1289_v0 = vadd.f32 %v1288_v62, %v1287_v61  ;;  %v1290_v1 = vpop.f32.mrb[6].mxu0  ;;  %v1718_v4 = vadd.f32 %v1360_v2, %v1359_v63  ;;  %v1362_v5 = vpop.f32.mrb[6].mxu1 }
 0x100   :  { %v1291_v3 = vpop.f32.mrb[7].mxu0  ;;  %v1363_v7 = vpop.f32.mrb[7].mxu1 }
 0x101   :  { %v1292_v6 = vadd.f32 %v1291_v3, %v1290_v1  ;;  %1415 = vmatprep.mubr.msk.f32.mxu1 %vm507_vm0, %v1289_v0  ;;  %v1721_v8 = vadd.f32 %v1363_v7, %v1362_v5 }
 0x103   :  { %1416 = vmatmul.mubr.msk.f32.gmra.mrb[18].mxu1 %vm507_vm0, %v1292_v6 }
 0x105   :  { %v1293_v9 = vpop.f32.mrb[8].mxu0  ;;  %v1365_v11 = vpop.f32.mrb[8].mxu1 }
 0x106   :  { %v1294_v10 = vpop.f32.mrb[9].mxu0  ;;  %v1366_v14 = vpop.f32.mrb[9].mxu1 }
 0x107   :  { %v1295_v12 = vadd.f32 %v1294_v10, %v1293_v9  ;;  %v1296_v13 = vpop.f32.mrb[10].mxu0  ;;  %v1724_v16 = vadd.f32 %v1366_v14, %v1365_v11  ;;  %v1368_v17 = vpop.f32.mrb[10].mxu1 }
 0x108   :  { %v1297_v15 = vpop.f32.mrb[11].mxu0  ;;  %v1369_v19 = vpop.f32.mrb[11].mxu1 }
 0x109   :  { %v1298_v18 = vadd.f32 %v1297_v15, %v1296_v13  ;;  %1418 = vmatprep.mubr.msk.f32.mxu1 %vm507_vm0, %v1295_v12  ;;  %v1727_v20 = vadd.f32 %v1369_v19, %v1368_v17 }
 0x10b   :  { %1419 = vmatmul.mubr.msk.f32.gmra.mrb[20].mxu1 %vm507_vm0, %v1298_v18 }
 0x10d   :  { %v1299_v21 = vpop.f32.mrb[12].mxu0  ;;  %v1371_v23 = vpop.f32.mrb[12].mxu1 }
 0x10e   :  { %v1300_v22 = vpop.f32.mrb[13].mxu0  ;;  %v1372_v26 = vpop.f32.mrb[13].mxu1 }
 0x10f   :  { %v1301_v24 = vadd.f32 %v1300_v22, %v1299_v21  ;;  %v1302_v25 = vpop.f32.mrb[14].mxu0  ;;  %v1730_v28 = vadd.f32 %v1372_v26, %v1371_v23  ;;  %v1374_v29 = vpop.f32.mrb[14].mxu1 }
 0x110   :  { %v1303_v27 = vpop.f32.mrb[15].mxu0  ;;  %v1375_v31 = vpop.f32.mrb[15].mxu1 }
 0x111   :  { %v1304_v30 = vadd.f32 %v1303_v27, %v1302_v25  ;;  %1421 = vmatprep.mubr.msk.f32.mxu1 %vm507_vm0, %v1301_v24  ;;  %v1733_v32 = vadd.f32 %v1375_v31, %v1374_v29 }
 0x113   :  { %1422 = vmatmul.mubr.msk.f32.gmra.mrb[22].mxu1 %vm507_vm0, %v1304_v30 }
 0x115   :  { %v1305_v33 = vpop.f32.mrb[16].mxu0 }
 0x116   :  { %v1306_v34 = vpop.f32.mrb[17].mxu0 }
 0x117   :  { %v1307_v35 = vadd.f32 %v1306_v34, %v1305_v33  ;;  %v1308_v36 = vpop.f32.mrb[18].mxu0 }
 0x118   :  { %v1309_v37 = vpop.f32.mrb[19].mxu0 }
 0x119   :  { %v1310_v38 = vadd.f32 %v1309_v37, %v1308_v36  ;;  %1424 = vmatprep.mubr.msk.f32.mxu1 %vm507_vm0, %v1307_v35 }
 0x11b   :  { %1425 = vmatmul.mubr.msk.f32.gmra.mrb[24].mxu1 %vm507_vm0, %v1310_v38 }
 0x11d   :  { %v1311_v39 = vpop.f32.mrb[20].mxu0 }
 0x11e   :  { %v1312_v40 = vpop.f32.mrb[21].mxu0 }
 0x11f   :  { %v1313_v41 = vadd.f32 %v1312_v40, %v1311_v39  ;;  %v1314_v42 = vpop.f32.mrb[22].mxu0 }
 0x120   :  { %v1315_v43 = vpop.f32.mrb[23].mxu0 }
 0x121   :  { %v1316_v44 = vadd.f32 %v1315_v43, %v1314_v42  ;;  %1427 = vmatprep.mubr.msk.f32.mxu1 %vm507_vm0, %v1313_v41 }
 0x123   :  { %1428 = vmatmul.mubr.msk.f32.gmra.mrb[26].mxu1 %vm507_vm0, %v1316_v44 }
 0x125   :  { %v1317_v45 = vpop.f32.mrb[24].mxu0 }
 0x126   :  { %v1318_v46 = vpop.f32.mrb[25].mxu0 }
 0x127   :  { %v1319_v47 = vadd.f32 %v1318_v46, %v1317_v45  ;;  %v1320_v48 = vpop.f32.mrb[26].mxu0 }
 0x128   :  { %v1321_v49 = vpop.f32.mrb[27].mxu0 }
 0x129   :  { %v1322_v50 = vadd.f32 %v1321_v49, %v1320_v48  ;;  %1430 = vmatprep.mubr.msk.f32.mxu1 %vm507_vm0, %v1319_v47 }
 0x12b   :  { %1431 = vmatmul.mubr.msk.f32.gmra.mrb[28].mxu1 %vm507_vm0, %v1322_v50 }
 0x12d   :  { %v1323_v51 = vpop.f32.mrb[28].mxu0 }
 0x12e   :  { %v1324_v52 = vpop.f32.mrb[29].mxu0 }
 0x12f   :  { %v1325_v53 = vadd.f32 %v1324_v52, %v1323_v51  ;;  %v1326_v54 = vpop.f32.mrb[30].mxu0 }
 0x130   :  { %v1327_v55 = vpop.f32.mrb[31].mxu0 }
 0x131   :  { %v1328_v57 = vadd.f32 %v1327_v55, %v1326_v54  ;;  %1433 = vmatprep.mubr.msk.f32.mxu1 %vm507_vm0, %v1325_v53 }
 0x133   :  { %1434 = vmatmul.mubr.msk.f32.gmra.mrb[30].mxu1 %vm507_vm0, %v1328_v57 }
 0x135   :  { %v1329_v58 = vpop.f32.mrb[32].mxu0 }
 0x136   :  { %v1330_v59 = vpop.f32.mrb[33].mxu0 }
 0x137   :  { %v1331_v61 = vadd.f32 %v1330_v59, %v1329_v58  ;;  %v1332_v62 = vpop.f32.mrb[34].mxu0 }
 0x138   :  { %v1333_v63 = vpop.f32.mrb[35].mxu0 }
 0x139   :  { %v1334_v0 = vadd.f32 %v1333_v63, %v1332_v62  ;;  %1436 = vmatprep.mubr.msk.f32.mxu1 %vm507_vm0, %v1331_v61 }
 0x13b   :  { %1437 = vmatmul.mubr.msk.f32.gmra.mrb[32].mxu1 %vm507_vm0, %v1334_v0 }
 0x13d   :  { %v1335_v1 = vpop.f32.mrb[36].mxu0 }
 0x13e   :  { %v1336_v2 = vpop.f32.mrb[37].mxu0 }
 0x13f   :  { %v1337_v3 = vadd.f32 %v1336_v2, %v1335_v1  ;;  %v1338_v5 = vpop.f32.mrb[38].mxu0 }
 0x140   :  { %v1339_v6 = vpop.f32.mrb[39].mxu0 }
 0x141   :  { %v1340_v7 = vadd.f32 %v1339_v6, %v1338_v5  ;;  %1439 = vmatprep.mubr.msk.f32.mxu1 %vm507_vm0, %v1337_v3 }
 0x143   :  { %1440 = vmatmul.mubr.msk.f32.gmra.mrb[34].mxu1 %vm507_vm0, %v1340_v7 }
 0x145   :  { %v1341_v9 = vpop.f32.mrb[40].mxu0 }
 0x146   :  { %v1342_v10 = vpop.f32.mrb[41].mxu0 }
 0x147   :  { %v1343_v11 = vadd.f32 %v1342_v10, %v1341_v9  ;;  %v1344_v12 = vpop.f32.mrb[42].mxu0 }
 0x148   :  { %v1345_v13 = vpop.f32.mrb[43].mxu0 }
 0x149   :  { %v1346_v14 = vadd.f32 %v1345_v13, %v1344_v12  ;;  %1442 = vmatprep.mubr.msk.f32.mxu1 %vm507_vm0, %v1343_v11 }
 0x14b   :  { %1443 = vmatmul.mubr.msk.f32.gmra.mrb[36].mxu1 %vm507_vm0, %v1346_v14 }
 0x14d   :  { %v1347_v15 = vpop.f32.mrb[44].mxu0 }
 0x14e   :  { %v1348_v17 = vpop.f32.mrb[45].mxu0 }
 0x14f   :  { %v1349_v18 = vadd.f32 %v1348_v17, %v1347_v15  ;;  %v1350_v19 = vpop.f32.mrb[46].mxu0 }
 0x150   :  { %v1351_v21 = vpop.f32.mrb[47].mxu0 }
 0x151   :  { %v1352_v22 = vadd.f32 %v1351_v21, %v1350_v19  ;;  %1445 = vmatprep.mubr.msk.f32.mxu1 %vm507_vm0, %v1349_v18 }
 0x153   :  { %1446 = vmatmul.mubr.msk.f32.gmra.mrb[38].mxu1 %vm507_vm0, %v1352_v22 }
 0x154   :  { %1448 = vmatprep.mubr.msk.f32.mxu1 %vm507_vm0, %v1712_v56  ;;  %v1771_v56 = vld [vmem:[%s1856_s3] ss:$0 sm:$0xff] }
 0x157   :  { %1449 = vmatmul.mubr.msk.f32.gmra.mrb[40].mxu1 %vm507_vm0, %v1715_v60 }
 0x158   :  { %1451 = vmatprep.mubr.msk.f32.mxu1 %vm507_vm0, %v1718_v4 }
 0x15b   :  { %1452 = vmatmul.mubr.msk.f32.gmra.mrb[42].mxu1 %vm507_vm0, %v1721_v8 }
 0x15c   :  { %1454 = vmatprep.mubr.msk.f32.mxu1 %vm507_vm0, %v1724_v16 }
 0x15f   :  { %1455 = vmatmul.mubr.msk.f32.gmra.mrb[44].mxu1 %vm507_vm0, %v1727_v20 }
 0x160   :  { %1457 = vmatprep.mubr.msk.f32.mxu1 %vm507_vm0, %v1730_v28 }
 0x163   :  { %1458 = vmatmul.mubr.msk.f32.gmra.mrb[46].mxu1 %vm507_vm0, %v1733_v32 }
 0x1ce   :  { %v1414_v60 = vpop.f32.mrb[16].mxu1 }
 0x1cf   :  { %v676_v4 = vadd.f32 %v1414_v60, %v1771_v56  ;;  %v670_v8 = vpop.f32.mrb[17].mxu1 }
 0x1d0   :  { %v671_v16 = vadd.f32 %v1771_v56, %v670_v8 }
 0x1d1   :  { %v830_v23 = vmax.f32 %v676_v4, 0.0 }
 0x1d2   :  { %v829_v24 = vmax.f32 %v671_v16, 0.0 }
 0x1d4   :  { %v1173_v20 = vpack.c.bf16 %v830_v23, %v829_v24 }
 0x1d6   :  { %1174 = vst [vmem:[%s1857_s4] sm:$0xff] %v1173_v20   ;;  %v1417_v25 = vpop.f32.mrb[18].mxu1 }
 0x1d7   :  { %v686_v26 = vadd.f32 %v1417_v25, %v1771_v56  ;;  %v680_v27 = vpop.f32.mrb[19].mxu1 }
 0x1d8   :  { %v681_v28 = vadd.f32 %v1771_v56, %v680_v27 }
 0x1d9   :  { %v832_v29 = vmax.f32 %v686_v26, 0.0 }
 0x1da   :  { %v831_v30 = vmax.f32 %v681_v28, 0.0 }
 0x1dc   :  { %v1178_v31 = vpack.c.bf16 %v832_v29, %v831_v30 }
 0x1de   :  { %1250 = vst [vmem:[%s1857_s4 + $0x8] sm:$0xff] %v1178_v31   ;;  %v1420_v32 = vpop.f32.mrb[20].mxu1 }
 0x1df   :  { %v696_v33 = vadd.f32 %v1420_v32, %v1771_v56  ;;  %v690_v34 = vpop.f32.mrb[21].mxu1 }
 0x1e0   :  { %v691_v35 = vadd.f32 %v1771_v56, %v690_v34 }
 0x1e1   :  { %v834_v36 = vmax.f32 %v696_v33, 0.0 }
 0x1e2   :  { %v833_v37 = vmax.f32 %v691_v35, 0.0 }
 0x1e4   :  { %v1183_v38 = vpack.c.bf16 %v834_v36, %v833_v37 }
 0x1e6   :  { %1251 = vst [vmem:[%s1857_s4 + $0x10] sm:$0xff] %v1183_v38   ;;  %v1423_v39 = vpop.f32.mrb[22].mxu1 }
 0x1e7   :  { %v706_v40 = vadd.f32 %v1423_v39, %v1771_v56  ;;  %v700_v41 = vpop.f32.mrb[23].mxu1 }
 0x1e8   :  { %v701_v42 = vadd.f32 %v1771_v56, %v700_v41 }
 0x1e9   :  { %v836_v43 = vmax.f32 %v706_v40, 0.0 }
 0x1ea   :  { %v835_v44 = vmax.f32 %v701_v42, 0.0 }
 0x1ec   :  { %v1188_v45 = vpack.c.bf16 %v836_v43, %v835_v44 }
 0x1ee   :  { %1252 = vst [vmem:[%s1857_s4 + $0x18] sm:$0xff] %v1188_v45   ;;  %v1426_v46 = vpop.f32.mrb[24].mxu1 }
 0x1ef   :  { %v716_v47 = vadd.f32 %v1426_v46, %v1771_v56  ;;  %v710_v48 = vpop.f32.mrb[25].mxu1 }
 0x1f0   :  { %v711_v49 = vadd.f32 %v1771_v56, %v710_v48 }
 0x1f1   :  { %v838_v50 = vmax.f32 %v716_v47, 0.0 }
 0x1f2   :  { %v837_v51 = vmax.f32 %v711_v49, 0.0 }
 0x1f4   :  { %v1193_v52 = vpack.c.bf16 %v838_v50, %v837_v51 }
 0x1f6   :  { %1253 = vst [vmem:[%s1857_s4 + $0x20] sm:$0xff] %v1193_v52   ;;  %v1429_v53 = vpop.f32.mrb[26].mxu1 }
 0x1f7   :  { %v726_v54 = vadd.f32 %v1429_v53, %v1771_v56  ;;  %v720_v55 = vpop.f32.mrb[27].mxu1 }
 0x1f8   :  { %v721_v57 = vadd.f32 %v1771_v56, %v720_v55 }
 0x1f9   :  { %v840_v58 = vmax.f32 %v726_v54, 0.0 }
 0x1fa   :  { %v839_v59 = vmax.f32 %v721_v57, 0.0 }
 0x1fc   :  { %v1198_v61 = vpack.c.bf16 %v840_v58, %v839_v59 }
 0x1fe   :  { %1254 = vst [vmem:[%s1857_s4 + $0x28] sm:$0xff] %v1198_v61   ;;  %v1432_v62 = vpop.f32.mrb[28].mxu1 }
 0x1ff   :  { %v736_v63 = vadd.f32 %v1432_v62, %v1771_v56  ;;  %v730_v0 = vpop.f32.mrb[29].mxu1 }
 0x200   :  { %v731_v1 = vadd.f32 %v1771_v56, %v730_v0 }
 0x201   :  { %v842_v2 = vmax.f32 %v736_v63, 0.0 }
 0x202   :  { %v841_v3 = vmax.f32 %v731_v1, 0.0 }
 0x204   :  { %v1203_v5 = vpack.c.bf16 %v842_v2, %v841_v3 }
 0x206   :  { %1255 = vst [vmem:[%s1857_s4 + $0x30] sm:$0xff] %v1203_v5   ;;  %v1435_v6 = vpop.f32.mrb[30].mxu1 }
 0x207   :  { %v746_v7 = vadd.f32 %v1435_v6, %v1771_v56  ;;  %v740_v9 = vpop.f32.mrb[31].mxu1 }
 0x208   :  { %v741_v10 = vadd.f32 %v1771_v56, %v740_v9 }
 0x209   :  { %v844_v11 = vmax.f32 %v746_v7, 0.0 }
 0x20a   :  { %v843_v12 = vmax.f32 %v741_v10, 0.0 }
 0x20c   :  { %v1208_v13 = vpack.c.bf16 %v844_v11, %v843_v12 }
 0x20e   :  { %1256 = vst [vmem:[%s1857_s4 + $0x38] sm:$0xff] %v1208_v13   ;;  %v1438_v14 = vpop.f32.mrb[32].mxu1 }
 0x20f   :  { %v756_v15 = vadd.f32 %v1438_v14, %v1771_v56  ;;  %v750_v17 = vpop.f32.mrb[33].mxu1 }
 0x210   :  { %v751_v18 = vadd.f32 %v1771_v56, %v750_v17 }
 0x211   :  { %v846_v19 = vmax.f32 %v756_v15, 0.0 }
 0x212   :  { %v845_v21 = vmax.f32 %v751_v18, 0.0 }
 0x214   :  { %v1213_v22 = vpack.c.bf16 %v846_v19, %v845_v21 }
 0x216   :  { %1257 = vst [vmem:[%s1857_s4 + $0x40] sm:$0xff] %v1213_v22   ;;  %v1441_v60 = vpop.f32.mrb[34].mxu1 }
 0x217   :  { %v766_v4 = vadd.f32 %v1441_v60, %v1771_v56  ;;  %v760_v8 = vpop.f32.mrb[35].mxu1 }
 0x218   :  { %v761_v16 = vadd.f32 %v1771_v56, %v760_v8 }
 0x219   :  { %v848_v23 = vmax.f32 %v766_v4, 0.0 }
 0x21a   :  { %v847_v24 = vmax.f32 %v761_v16, 0.0 }
 0x21c   :  { %v1218_v20 = vpack.c.bf16 %v848_v23, %v847_v24 }
 0x21e   :  { %1258 = vst [vmem:[%s1857_s4 + $0x48] sm:$0xff] %v1218_v20   ;;  %v1444_v25 = vpop.f32.mrb[36].mxu1 }
 0x21f   :  { %v776_v26 = vadd.f32 %v1444_v25, %v1771_v56  ;;  %v770_v27 = vpop.f32.mrb[37].mxu1 }
 0x220   :  { %v771_v28 = vadd.f32 %v1771_v56, %v770_v27 }
 0x221   :  { %v850_v29 = vmax.f32 %v776_v26, 0.0 }
 0x222   :  { %v849_v30 = vmax.f32 %v771_v28, 0.0 }
 0x224   :  { %v1223_v31 = vpack.c.bf16 %v850_v29, %v849_v30 }
 0x226   :  { %1259 = vst [vmem:[%s1857_s4 + $0x50] sm:$0xff] %v1223_v31   ;;  %v1447_v32 = vpop.f32.mrb[38].mxu1 }
 0x227   :  { %v786_v33 = vadd.f32 %v1447_v32, %v1771_v56  ;;  %v780_v34 = vpop.f32.mrb[39].mxu1 }
 0x228   :  { %v781_v35 = vadd.f32 %v1771_v56, %v780_v34 }
 0x229   :  { %v852_v36 = vmax.f32 %v786_v33, 0.0 }
 0x22a   :  { %v851_v37 = vmax.f32 %v781_v35, 0.0  ;;  %v1450_v38 = vpop.f32.mrb[40].mxu1 }
 0x22b   :  { %v796_v39 = vadd.f32 %v1450_v38, %v1771_v56  ;;  %v790_v40 = vpop.f32.mrb[41].mxu1 }
 0x22c   :  { %v1228_v41 = vpack.c.bf16 %v852_v36, %v851_v37  ;;  %v791_v42 = vadd.f32 %v1771_v56, %v790_v40 }
 0x22d   :  { %v854_v43 = vmax.f32 %v796_v39, 0.0 }
 0x22e   :  { %1260 = vst [vmem:[%s1857_s4 + $0x58] sm:$0xff] %v1228_v41   ;;  %v853_v44 = vmax.f32 %v791_v42, 0.0  ;;  %v1453_v45 = vpop.f32.mrb[42].mxu1 }
 0x22f   :  { %v806_v46 = vadd.f32 %v1453_v45, %v1771_v56  ;;  %v800_v47 = vpop.f32.mrb[43].mxu1 }
 0x230   :  { %v1233_v48 = vpack.c.bf16 %v854_v43, %v853_v44  ;;  %v801_v49 = vadd.f32 %v1771_v56, %v800_v47 }
 0x231   :  { %v856_v50 = vmax.f32 %v806_v46, 0.0 }
 0x232   :  { %1261 = vst [vmem:[%s1857_s4 + $0x60] sm:$0xff] %v1233_v48   ;;  %v855_v51 = vmax.f32 %v801_v49, 0.0  ;;  %v1456_v52 = vpop.f32.mrb[44].mxu1 }
 0x233   :  { %v816_v53 = vadd.f32 %v1456_v52, %v1771_v56  ;;  %v810_v54 = vpop.f32.mrb[45].mxu1 }
 0x234   :  { %v1238_v55 = vpack.c.bf16 %v856_v50, %v855_v51  ;;  %v811_v57 = vadd.f32 %v1771_v56, %v810_v54 }
 0x235   :  { %v858_v58 = vmax.f32 %v816_v53, 0.0 }
 0x236   :  { %1262 = vst [vmem:[%s1857_s4 + $0x68] sm:$0xff] %v1238_v55   ;;  %v857_v59 = vmax.f32 %v811_v57, 0.0  ;;  %v1459_v61 = vpop.f32.mrb[46].mxu1 }
 0x237   :  { %v826_v62 = vadd.f32 %v1459_v61, %v1771_v56  ;;  %v820_v63 = vpop.f32.mrb[47].mxu1 }
 0x238   :  { %v1243_v0 = vpack.c.bf16 %v858_v58, %v857_v59  ;;  %v821_v1 = vadd.f32 %v1771_v56, %v820_v63 }
 0x239   :  { %v860_v2 = vmax.f32 %v826_v62, 0.0 }
 0x23a   :  { %1263 = vst [vmem:[%s1857_s4 + $0x70] sm:$0xff] %v1243_v0   ;;  %v859_v3 = vmax.f32 %v821_v1, 0.0 }
 0x23c   :  { %v1248_v5 = vpack.c.bf16 %v860_v2, %v859_v3 }
 0x23e   :  { %1264 = vst [vmem:[%s1857_s4 + $0x78] sm:$0xff] %v1248_v5  }

// kernel: gcn_forward.3
= control target key start
LH: loop header
LB: loop body
LE: loop exit
PB: predicated region body
PF: predicated region fallthrough
CT: control target
= control target key end

     0   :  { %s2364_s1 = inlined_call_operand.vmem [shape: bf16[256,128], index: 1, kind: input, shape index: {}]   ;;  %s2365_s0 = inlined_call_operand.vmem [shape: bf16[256,256], index: 0, kind: input, shape index: {}]   ;;  %s2366_s2 = inlined_call_operand.vmem [shape: f32[128,128], index: 2, kind: input, shape index: {}]   ;;  %s2367_s3 = inlined_call_operand.vmem [shape: f32[1,128], index: 3, kind: input, shape index: {}]   ;;  %s2368_s4 = inlined_call_operand.vmem [shape: f32[256,128], index: 4, kind: output, shape index: {}]  }
   0x1   :  { %v1475_v0 = vld [vmem:[%s2364_s1 + $0x40] sm:$0xff]   ;;  %v1477_v2 = vld [vmem:[%s2364_s1 + $0x48] sm:$0xff]   ;;  %v1479_v4 = vld [vmem:[%s2364_s1 + $0x50] sm:$0xff]  }
   0x2   :  { %v1476_v1 = vld [vmem:[%s2364_s1] sm:$0xff]   ;;  %1187 = vmatprep.subr.bf16.mxu0 %v1475_v0  ;;  %1459 = vmatprep.subr.bf16.mxu1 %v1475_v0  ;;  %v1478_v3 = vld [vmem:[%s2364_s1 + $0x8] sm:$0xff]   ;;  %v1480_v5 = vld [vmem:[%s2364_s1 + $0x10] sm:$0xff]  }
   0x3   :  { %1188 = vmatpush3.bf16.msra.mxu0 %v1476_v1  ;;  %1467 = vmatpush3.bf16.msra.mxu1 %v1476_v1  ;;  %v1481_v6 = vld [vmem:[%s2364_s1 + $0x58] sm:$0xff]   ;;  %v1483_v8 = vld [vmem:[%s2364_s1 + $0x60] sm:$0xff]   ;;  %v1485_v10 = vld [vmem:[%s2364_s1 + $0x68] sm:$0xff]  }
   0x4   :  { %1189 = vmatprep.subr.bf16.mxu0 %v1477_v2  ;;  %1460 = vmatprep.subr.bf16.mxu1 %v1477_v2  ;;  %v1482_v7 = vld [vmem:[%s2364_s1 + $0x18] sm:$0xff]   ;;  %v1484_v9 = vld [vmem:[%s2364_s1 + $0x20] sm:$0xff]   ;;  %v1486_v12 = vld [vmem:[%s2364_s1 + $0x28] sm:$0xff]  }
   0x5   :  { %v1493_v11 = vld [vmem:[%s2365_s0 + $0x4] ss:$8 sps:$4 sm:$0xff]   ;;  %v1487_v13 = vld [vmem:[%s2364_s1 + $0x70] sm:$0xff]   ;;  %v1489_v15 = vld [vmem:[%s2364_s1 + $0x78] sm:$0xff]  }
   0x6   :  { %370 = vmatprep.mubr.bf16.mxu0 %v1493_v11  ;;  %v1488_v14 = vld [vmem:[%s2364_s1 + $0x30] sm:$0xff]   ;;  %v1490_v16 = vld [vmem:[%s2364_s1 + $0x38] sm:$0xff]   ;;  %v1491_v17 = vld [vmem:[%s2365_s0] ss:$8 sps:$4 sm:$0xff]  }
   0x7   :  { %1190 = vmatpush3.bf16.msra.mxu0 %v1478_v3  ;;  %1468 = vmatpush3.bf16.msra.mxu1 %v1478_v3  ;;  %v1523_v18 = vld [vmem:[%s2365_s0 + $0xc4] ss:$8 sps:$4 sm:$0xff]   ;;  %v1494_v19 = vld [vmem:[%s2365_s0 + $0x14] ss:$8 sps:$4 sm:$0xff]   ;;  %v1521_v20 = vld [vmem:[%s2365_s0 + $0xc0] ss:$8 sps:$4 sm:$0xff]  }
   0x8   :  { %1191 = vmatprep.subr.bf16.mxu0 %v1479_v4  ;;  %1461 = vmatprep.subr.bf16.mxu1 %v1479_v4  ;;  %v1527_v21 = vld [vmem:[%s2365_s0 + $0xd4] ss:$8 sps:$4 sm:$0xff]   ;;  %v1496_v22 = vld [vmem:[%s2365_s0 + $0x10] ss:$8 sps:$4 sm:$0xff]   ;;  %v499_v23 = vld [vmem:[%s2366_s2] sm:$0xff] }
   0x9   :  { %466 = vmatprep.mubr.bf16.mxu1 %v1523_v18  ;;  %v500_v24 = vld [vmem:[%s2366_s2 + $0x8] sm:$0xff]  ;;  %v501_v27 = vld [vmem:[%s2366_s2 + $0x10] sm:$0xff]  ;;  %v502_v28 = vld [vmem:[%s2366_s2 + $0x18] sm:$0xff] }
   0xa   :  { %v1497_v25 = vld [vmem:[%s2365_s0 + $0x24] ss:$8 sps:$4 sm:$0xff]   ;;  %v1427_v26 = vpack.c.bf16 %v500_v24, %v499_v23  ;;  %v1529_v29 = vld [vmem:[%s2365_s0 + $0xd0] ss:$8 sps:$4 sm:$0xff]   ;;  %v1431_v30 = vpack.c.bf16 %v502_v28, %v501_v27  ;;  %v1499_v37 = vld [vmem:[%s2365_s0 + $0x20] ss:$8 sps:$4 sm:$0xff]  }
   0xb   :  { %1192 = vmatpush3.bf16.msra.mxu0 %v1480_v5  ;;  %1469 = vmatpush3.bf16.msra.mxu1 %v1480_v5  ;;  %v503_v31 = vld [vmem:[%s2366_s2 + $0x20] sm:$0xff]  ;;  %v504_v32 = vld [vmem:[%s2366_s2 + $0x28] sm:$0xff]  ;;  %v505_v35 = vld [vmem:[%s2366_s2 + $0x30] sm:$0xff] }
   0xc   :  { %1193 = vmatprep.subr.bf16.mxu0 %v1481_v6  ;;  %1462 = vmatprep.subr.bf16.mxu1 %v1481_v6  ;;  %v1533_v33 = vld [vmem:[%s2365_s0 + $0xe4] ss:$8 sps:$4 sm:$0xff]   ;;  %v1435_v34 = vpack.c.bf16 %v504_v32, %v503_v31  ;;  %v506_v36 = vld [vmem:[%s2366_s2 + $0x38] sm:$0xff]  ;;  %v1535_v40 = vld [vmem:[%s2365_s0 + $0xe0] ss:$8 sps:$4 sm:$0xff]  }
   0xd   :  { %v1500_v38 = vld [vmem:[%s2365_s0 + $0x34] ss:$8 sps:$4 sm:$0xff]   ;;  %v1439_v39 = vpack.c.bf16 %v506_v36, %v505_v35  ;;  %v507_v41 = vld [vmem:[%s2366_s2 + $0x40] sm:$0xff]  ;;  %v508_v42 = vld [vmem:[%s2366_s2 + $0x48] sm:$0xff] }
   0xe   :  { %v1536_v43 = vld [vmem:[%s2365_s0 + $0xf4] ss:$8 sps:$4 sm:$0xff]   ;;  %v1443_v44 = vpack.c.bf16 %v508_v42, %v507_v41  ;;  %v1502_v47 = vld [vmem:[%s2365_s0 + $0x30] ss:$8 sps:$4 sm:$0xff]   ;;  %v1503_v48 = vld [vmem:[%s2365_s0 + $0x44] ss:$8 sps:$4 sm:$0xff]  }
   0xf   :  { %1194 = vmatpush3.bf16.msra.mxu0 %v1482_v7  ;;  %1470 = vmatpush3.bf16.msra.mxu1 %v1482_v7  ;;  %v509_v45 = vld [vmem:[%s2366_s2 + $0x50] sm:$0xff]  ;;  %v510_v46 = vld [vmem:[%s2366_s2 + $0x58] sm:$0xff]  ;;  %v511_v51 = vld [vmem:[%s2366_s2 + $0x60] sm:$0xff] }
  0x10   :  { %1195 = vmatprep.subr.bf16.mxu0 %v1483_v8  ;;  %1463 = vmatprep.subr.bf16.mxu1 %v1483_v8  ;;  %v1447_v49 = vpack.c.bf16 %v510_v46, %v509_v45  ;;  %v1538_v50 = vld [vmem:[%s2365_s0 + $0xf0] ss:$8 sps:$4 sm:$0xff]   ;;  %v512_v52 = vld [vmem:[%s2366_s2 + $0x68] sm:$0xff]  ;;  %v1506_v55 = vld [vmem:[%s2365_s0 + $0x54] ss:$8 sps:$4 sm:$0xff]  }
  0x11   :  { %v1451_v53 = vpack.c.bf16 %v512_v52, %v511_v51  ;;  %v1505_v54 = vld [vmem:[%s2365_s0 + $0x40] ss:$8 sps:$4 sm:$0xff]   ;;  %v1508_v56 = vld [vmem:[%s2365_s0 + $0x50] ss:$8 sps:$4 sm:$0xff]   ;;  %v1509_v57 = vld [vmem:[%s2365_s0 + $0x64] ss:$8 sps:$4 sm:$0xff]  }
  0x12   :  { %v1511_v58 = vld [vmem:[%s2365_s0 + $0x60] ss:$8 sps:$4 sm:$0xff]   ;;  %v1512_v59 = vld [vmem:[%s2365_s0 + $0x74] ss:$8 sps:$4 sm:$0xff]   ;;  %v1514_v60 = vld [vmem:[%s2365_s0 + $0x70] ss:$8 sps:$4 sm:$0xff]  }
  0x13   :  { %1196 = vmatpush3.bf16.msra.mxu0 %v1484_v9  ;;  %1471 = vmatpush3.bf16.msra.mxu1 %v1484_v9  ;;  %v1515_v61 = vld [vmem:[%s2365_s0 + $0x84] ss:$8 sps:$4 sm:$0xff]   ;;  %v1517_v62 = vld [vmem:[%s2365_s0 + $0x80] ss:$8 sps:$4 sm:$0xff]   ;;  %v1518_v63 = vld [vmem:[%s2365_s0 + $0x94] ss:$8 sps:$4 sm:$0xff]  }
  0x14   :  { %1197 = vmatprep.subr.bf16.mxu0 %v1485_v10  ;;  %1464 = vmatprep.subr.bf16.mxu1 %v1485_v10  ;;  %v1520_v0 = vld [vmem:[%s2365_s0 + $0x90] ss:$8 sps:$4 sm:$0xff]   ;;  %v1524_v1 = vld [vmem:[%s2365_s0 + $0xa4] ss:$8 sps:$4 sm:$0xff]   ;;  %v1526_v2 = vld [vmem:[%s2365_s0 + $0xa0] ss:$8 sps:$4 sm:$0xff]  }
  0x15   :  { %v1530_v3 = vld [vmem:[%s2365_s0 + $0xb4] ss:$8 sps:$4 sm:$0xff]   ;;  %v1532_v7 = vld [vmem:[%s2365_s0 + $0xb0] ss:$8 sps:$4 sm:$0xff]  }
  0x16   :  { %v513_v4 = vld [vmem:[%s2366_s2 + $0x70] sm:$0xff]  ;;  %v514_v5 = vld [vmem:[%s2366_s2 + $0x78] sm:$0xff] }
  0x17   :  { %1198 = vmatpush3.bf16.msra.mxu0 %v1486_v12  ;;  %1472 = vmatpush3.bf16.msra.mxu1 %v1486_v12  ;;  %v1455_v6 = vpack.c.bf16 %v514_v5, %v513_v4 }
  0x18   :  { %1199 = vmatprep.subr.bf16.mxu0 %v1487_v13  ;;  %1465 = vmatprep.subr.bf16.mxu1 %v1487_v13 }
  0x1b   :  { %1200 = vmatpush3.bf16.msra.mxu0 %v1488_v14  ;;  %1473 = vmatpush3.bf16.msra.mxu1 %v1488_v14 }
  0x1c   :  { %1201 = vmatprep.subr.bf16.mxu0 %v1489_v15  ;;  %1466 = vmatprep.subr.bf16.mxu1 %v1489_v15 }
  0x1f   :  { %1202 = vmatpush3.bf16.msra.mxu0 %v1490_v16  ;;  %1474 = vmatpush3.bf16.msra.mxu1 %v1490_v16 }
  0x20   :  { %1428 = vmatprep.subr.bf16.mxu1 %v1427_v26 }
  0x22   :  { %371 = vmatmul.mubr.bf16.vlgmr.msra.gmra.mrb[0].mxu0 %v1491_v17  ;;  %467 = vmatmul.mubr.bf16.vlgmr.msra.gmra.mrb[0].mxu1 %v1521_v20 }
  0x23   :  { %378 = vmatprep.mubr.bf16.mxu0 %v1494_v19  ;;  %474 = vmatprep.mubr.bf16.mxu1 %v1527_v21 }
  0x24   :  { %1430 = vmatpush3.bf16.msra.mxu1 %v1427_v26 }
  0x25   :  { %1432 = vmatprep.subr.bf16.mxu1 %v1431_v30 }
  0x28   :  { %1434 = vmatpush3.bf16.msra.mxu1 %v1431_v30 }
  0x29   :  { %1436 = vmatprep.subr.bf16.mxu1 %v1435_v34 }
  0x2a   :  { %379 = vmatmul.mubr.bf16.gmra.mrb[4].mxu0 %v1496_v22  ;;  %475 = vmatmul.mubr.bf16.gmra.mrb[4].mxu1 %v1529_v29 }
  0x2b   :  { %386 = vmatprep.mubr.bf16.mxu0 %v1497_v25  ;;  %482 = vmatprep.mubr.bf16.mxu1 %v1533_v33 }
  0x2c   :  { %1438 = vmatpush3.bf16.msra.mxu1 %v1435_v34 }
  0x2d   :  { %1440 = vmatprep.subr.bf16.mxu1 %v1439_v39 }
  0x30   :  { %1442 = vmatpush3.bf16.msra.mxu1 %v1439_v39 }
  0x31   :  { %1444 = vmatprep.subr.bf16.mxu1 %v1443_v44 }
  0x32   :  { %387 = vmatmul.mubr.bf16.gmra.mrb[8].mxu0 %v1499_v37  ;;  %483 = vmatmul.mubr.bf16.gmra.mrb[8].mxu1 %v1535_v40 }
  0x33   :  { %394 = vmatprep.mubr.bf16.mxu0 %v1500_v38  ;;  %490 = vmatprep.mubr.bf16.mxu1 %v1536_v43 }
  0x34   :  { %1446 = vmatpush3.bf16.msra.mxu1 %v1443_v44 }
  0x35   :  { %1448 = vmatprep.subr.bf16.mxu1 %v1447_v49 }
  0x38   :  { %1450 = vmatpush3.bf16.msra.mxu1 %v1447_v49 }
  0x39   :  { %1452 = vmatprep.subr.bf16.mxu1 %v1451_v53 }
  0x3a   :  { %395 = vmatmul.mubr.bf16.gmra.mrb[12].mxu0 %v1502_v47  ;;  %491 = vmatmul.mubr.bf16.gmra.mrb[12].mxu1 %v1538_v50 }
  0x3b   :  { %402 = vmatprep.mubr.bf16.mxu0 %v1503_v48 }
  0x3c   :  { %1454 = vmatpush3.bf16.msra.mxu1 %v1451_v53 }
  0x3d   :  { %1456 = vmatprep.subr.bf16.mxu1 %v1455_v6 }
  0x40   :  { %1458 = vmatpush3.bf16.msra.mxu1 %v1455_v6 }
  0x42   :  { %403 = vmatmul.mubr.bf16.gmra.mrb[16].mxu0 %v1505_v54 }
  0x43   :  { %410 = vmatprep.mubr.bf16.mxu0 %v1506_v55 }
  0x4a   :  { %411 = vmatmul.mubr.bf16.gmra.mrb[20].mxu0 %v1508_v56 }
  0x4b   :  { %418 = vmatprep.mubr.bf16.mxu0 %v1509_v57 }
  0x52   :  { %419 = vmatmul.mubr.bf16.gmra.mrb[24].mxu0 %v1511_v58 }
  0x53   :  { %426 = vmatprep.mubr.bf16.mxu0 %v1512_v59 }
  0x5a   :  { %427 = vmatmul.mubr.bf16.gmra.mrb[28].mxu0 %v1514_v60 }
  0x5b   :  { %434 = vmatprep.mubr.bf16.mxu0 %v1515_v61 }
  0x62   :  { %435 = vmatmul.mubr.bf16.gmra.mrb[32].mxu0 %v1517_v62 }
  0x63   :  { %442 = vmatprep.mubr.bf16.mxu0 %v1518_v63 }
  0x6a   :  { %443 = vmatmul.mubr.bf16.gmra.mrb[36].mxu0 %v1520_v0 }
  0x6b   :  { %450 = vmatprep.mubr.bf16.mxu0 %v1524_v1 }
  0x72   :  { %451 = vmatmul.mubr.bf16.gmra.mrb[40].mxu0 %v1526_v2 }
  0x73   :  { %458 = vmatprep.mubr.bf16.mxu0 %v1530_v3 }
  0x7a   :  { %459 = vmatmul.mubr.bf16.gmra.mrb[44].mxu0 %v1532_v7 }
  0xf5   :  { %v1203_v8 = vpop.f32.mrb[0].mxu0  ;;  %v1275_v10 = vpop.f32.mrb[0].mxu1 }
  0xf6   :  { %v1204_v9 = vpop.f32.mrb[1].mxu0  ;;  %v1276_v13 = vpop.f32.mrb[1].mxu1 }
  0xf7   :  { %v1205_v11 = vadd.f32 %v1204_v9, %v1203_v8  ;;  %v1206_v12 = vpop.f32.mrb[2].mxu0  ;;  %v1884_v15 = vadd.f32 %v1276_v13, %v1275_v10  ;;  %v1278_v16 = vpop.f32.mrb[2].mxu1 }
  0xf8   :  { %v1207_v14 = vpop.f32.mrb[3].mxu0  ;;  %v1279_v18 = vpop.f32.mrb[3].mxu1 }
  0xf9   :  { %v1208_v17 = vadd.f32 %v1207_v14, %v1206_v12  ;;  %1379 = vmatprep.mubr.f32.mxu1 %v1205_v11  ;;  %v1886_v19 = vadd.f32 %v1279_v18, %v1278_v16 }
  0xfb   :  { %1380 = vmatmul.mubr.f32.vlgmr.msra.gmra.mrb[16].mxu1 %v1208_v17 }
  0xfd   :  { %v1209_v20 = vpop.f32.mrb[4].mxu0  ;;  %v1281_v22 = vpop.f32.mrb[4].mxu1 }
  0xfe   :  { %v1210_v21 = vpop.f32.mrb[5].mxu0  ;;  %v1282_v25 = vpop.f32.mrb[5].mxu1 }
  0xff   :  { %v1211_v23 = vadd.f32 %v1210_v21, %v1209_v20  ;;  %v1212_v24 = vpop.f32.mrb[6].mxu0  ;;  %v1888_v27 = vadd.f32 %v1282_v25, %v1281_v22  ;;  %v1284_v28 = vpop.f32.mrb[6].mxu1 }
 0x100   :  { %v1213_v26 = vpop.f32.mrb[7].mxu0  ;;  %v1285_v30 = vpop.f32.mrb[7].mxu1 }
 0x101   :  { %v1214_v29 = vadd.f32 %v1213_v26, %v1212_v24  ;;  %1382 = vmatprep.mubr.f32.mxu1 %v1211_v23  ;;  %v1890_v31 = vadd.f32 %v1285_v30, %v1284_v28 }
 0x103   :  { %1383 = vmatmul.mubr.f32.gmra.mrb[18].mxu1 %v1214_v29 }
 0x105   :  { %v1215_v32 = vpop.f32.mrb[8].mxu0  ;;  %v1287_v34 = vpop.f32.mrb[8].mxu1 }
 0x106   :  { %v1216_v33 = vpop.f32.mrb[9].mxu0  ;;  %v1288_v37 = vpop.f32.mrb[9].mxu1 }
 0x107   :  { %v1217_v35 = vadd.f32 %v1216_v33, %v1215_v32  ;;  %v1218_v36 = vpop.f32.mrb[10].mxu0  ;;  %v1892_v39 = vadd.f32 %v1288_v37, %v1287_v34  ;;  %v1290_v40 = vpop.f32.mrb[10].mxu1 }
 0x108   :  { %v1219_v38 = vpop.f32.mrb[11].mxu0  ;;  %v1291_v42 = vpop.f32.mrb[11].mxu1 }
 0x109   :  { %v1220_v41 = vadd.f32 %v1219_v38, %v1218_v36  ;;  %1385 = vmatprep.mubr.f32.mxu1 %v1217_v35  ;;  %v1894_v43 = vadd.f32 %v1291_v42, %v1290_v40 }
 0x10b   :  { %1386 = vmatmul.mubr.f32.gmra.mrb[20].mxu1 %v1220_v41 }
 0x10d   :  { %v1221_v44 = vpop.f32.mrb[12].mxu0  ;;  %v1293_v46 = vpop.f32.mrb[12].mxu1 }
 0x10e   :  { %v1222_v45 = vpop.f32.mrb[13].mxu0  ;;  %v1294_v49 = vpop.f32.mrb[13].mxu1 }
 0x10f   :  { %v1223_v47 = vadd.f32 %v1222_v45, %v1221_v44  ;;  %v1224_v48 = vpop.f32.mrb[14].mxu0  ;;  %v1896_v51 = vadd.f32 %v1294_v49, %v1293_v46  ;;  %v1296_v52 = vpop.f32.mrb[14].mxu1  ;;  %v747_v46 = vlaneseq }
 0x110   :  { %v1225_v50 = vpop.f32.mrb[15].mxu0  ;;  %v1297_v54 = vpop.f32.mrb[15].mxu1 }
 0x111   :  { %v1226_v53 = vadd.f32 %v1225_v50, %v1224_v48  ;;  %1388 = vmatprep.mubr.f32.mxu1 %v1223_v47  ;;  %v1898_v55 = vadd.f32 %v1297_v54, %v1296_v52  ;;  %v1908_v47 = vand.u32 127, %v747_v46 }
 0x113   :  { %1389 = vmatmul.mubr.f32.gmra.mrb[22].mxu1 %v1226_v53  ;;  %vm749_vm0 = vcmp.lt.s32.totalorder %v1908_v47, 4 }
 0x115   :  { %v1227_v56 = vpop.f32.mrb[16].mxu0 }
 0x116   :  { %v1228_v57 = vpop.f32.mrb[17].mxu0 }
 0x117   :  { %v1229_v58 = vadd.f32 %v1228_v57, %v1227_v56  ;;  %v1230_v59 = vpop.f32.mrb[18].mxu0 }
 0x118   :  { %v1231_v60 = vpop.f32.mrb[19].mxu0 }
 0x119   :  { %v1232_v61 = vadd.f32 %v1231_v60, %v1230_v59  ;;  %1391 = vmatprep.mubr.f32.mxu1 %v1229_v58 }
 0x11b   :  { %1392 = vmatmul.mubr.f32.gmra.mrb[24].mxu1 %v1232_v61 }
 0x11d   :  { %v1233_v62 = vpop.f32.mrb[20].mxu0 }
 0x11e   :  { %v1234_v63 = vpop.f32.mrb[21].mxu0 }
 0x11f   :  { %v1235_v0 = vadd.f32 %v1234_v63, %v1233_v62  ;;  %v1236_v1 = vpop.f32.mrb[22].mxu0 }
 0x120   :  { %v1237_v2 = vpop.f32.mrb[23].mxu0 }
 0x121   :  { %v1238_v3 = vadd.f32 %v1237_v2, %v1236_v1  ;;  %1394 = vmatprep.mubr.f32.mxu1 %v1235_v0 }
 0x123   :  { %1395 = vmatmul.mubr.f32.gmra.mrb[26].mxu1 %v1238_v3 }
 0x125   :  { %v1239_v4 = vpop.f32.mrb[24].mxu0 }
 0x126   :  { %v1240_v5 = vpop.f32.mrb[25].mxu0 }
 0x127   :  { %v1241_v6 = vadd.f32 %v1240_v5, %v1239_v4  ;;  %v1242_v7 = vpop.f32.mrb[26].mxu0 }
 0x128   :  { %v1243_v8 = vpop.f32.mrb[27].mxu0 }
 0x129   :  { %v1244_v9 = vadd.f32 %v1243_v8, %v1242_v7  ;;  %1397 = vmatprep.mubr.f32.mxu1 %v1241_v6 }
 0x12b   :  { %1398 = vmatmul.mubr.f32.gmra.mrb[28].mxu1 %v1244_v9 }
 0x12d   :  { %v1245_v10 = vpop.f32.mrb[28].mxu0 }
 0x12e   :  { %v1246_v11 = vpop.f32.mrb[29].mxu0 }
 0x12f   :  { %v1247_v12 = vadd.f32 %v1246_v11, %v1245_v10  ;;  %v1248_v13 = vpop.f32.mrb[30].mxu0 }
 0x130   :  { %v1249_v14 = vpop.f32.mrb[31].mxu0 }
 0x131   :  { %v1250_v16 = vadd.f32 %v1249_v14, %v1248_v13  ;;  %1400 = vmatprep.mubr.f32.mxu1 %v1247_v12 }
 0x133   :  { %1401 = vmatmul.mubr.f32.gmra.mrb[30].mxu1 %v1250_v16 }
 0x135   :  { %v1251_v17 = vpop.f32.mrb[32].mxu0 }
 0x136   :  { %v1252_v18 = vpop.f32.mrb[33].mxu0 }
 0x137   :  { %v1253_v20 = vadd.f32 %v1252_v18, %v1251_v17  ;;  %v1254_v21 = vpop.f32.mrb[34].mxu0 }
 0x138   :  { %v1255_v22 = vpop.f32.mrb[35].mxu0 }
 0x139   :  { %v1256_v23 = vadd.f32 %v1255_v22, %v1254_v21  ;;  %1403 = vmatprep.mubr.f32.mxu1 %v1253_v20 }
 0x13b   :  { %1404 = vmatmul.mubr.f32.gmra.mrb[32].mxu1 %v1256_v23 }
 0x13d   :  { %v1257_v24 = vpop.f32.mrb[36].mxu0 }
 0x13e   :  { %v1258_v25 = vpop.f32.mrb[37].mxu0 }
 0x13f   :  { %v1259_v26 = vadd.f32 %v1258_v25, %v1257_v24  ;;  %v1260_v28 = vpop.f32.mrb[38].mxu0 }
 0x140   :  { %v1261_v29 = vpop.f32.mrb[39].mxu0 }
 0x141   :  { %v1262_v30 = vadd.f32 %v1261_v29, %v1260_v28  ;;  %1406 = vmatprep.mubr.f32.mxu1 %v1259_v26 }
 0x143   :  { %1407 = vmatmul.mubr.f32.gmra.mrb[34].mxu1 %v1262_v30 }
 0x145   :  { %v1263_v32 = vpop.f32.mrb[40].mxu0 }
 0x146   :  { %v1264_v33 = vpop.f32.mrb[41].mxu0 }
 0x147   :  { %v1265_v34 = vadd.f32 %v1264_v33, %v1263_v32  ;;  %v1266_v35 = vpop.f32.mrb[42].mxu0 }
 0x148   :  { %v1267_v36 = vpop.f32.mrb[43].mxu0 }
 0x149   :  { %v1268_v37 = vadd.f32 %v1267_v36, %v1266_v35  ;;  %1409 = vmatprep.mubr.f32.mxu1 %v1265_v34 }
 0x14b   :  { %1410 = vmatmul.mubr.f32.gmra.mrb[36].mxu1 %v1268_v37 }
 0x14d   :  { %v1269_v38 = vpop.f32.mrb[44].mxu0 }
 0x14e   :  { %v1270_v40 = vpop.f32.mrb[45].mxu0 }
 0x14f   :  { %v1271_v41 = vadd.f32 %v1270_v40, %v1269_v38  ;;  %v1272_v42 = vpop.f32.mrb[46].mxu0 }
 0x150   :  { %v1273_v44 = vpop.f32.mrb[47].mxu0 }
 0x151   :  { %v1274_v45 = vadd.f32 %v1273_v44, %v1272_v42  ;;  %1412 = vmatprep.mubr.f32.mxu1 %v1271_v41 }
 0x153   :  { %1413 = vmatmul.mubr.f32.gmra.mrb[38].mxu1 %v1274_v45 }
 0x154   :  { %1415 = vmatprep.mubr.f32.mxu1 %v1884_v15  ;;  %v1913_v15 = vld [vmem:[%s2367_s3] ss:$0 sm:$0xff] }
 0x157   :  { %1416 = vmatmul.mubr.f32.gmra.mrb[40].mxu1 %v1886_v19 }
 0x158   :  { %1418 = vmatprep.mubr.f32.mxu1 %v1888_v27 }
 0x15b   :  { %1419 = vmatmul.mubr.f32.gmra.mrb[42].mxu1 %v1890_v31 }
 0x15c   :  { %1421 = vmatprep.mubr.f32.mxu1 %v1892_v39 }
 0x15f   :  { %1422 = vmatmul.mubr.f32.gmra.mrb[44].mxu1 %v1894_v43 }
 0x160   :  { %1424 = vmatprep.mubr.f32.mxu1 %v1896_v51 }
 0x163   :  { %1425 = vmatmul.mubr.f32.gmra.mrb[46].mxu1 %v1898_v55 }
 0x1ce   :  { %v1381_v19 = vpop.f32.mrb[16].mxu1 }
 0x1cf   :  { %v594_v27 = vadd.f32 %v1381_v19, %v1913_v15  ;;  %v588_v31 = vpop.f32.mrb[17].mxu1 }
 0x1d0   :  { %v589_v39 = vadd.f32 %v1913_v15, %v588_v31 }
 0x1d1   :  { %v1920_v43 = vsel %vm749_vm0, %v594_v27, -inf }
 0x1d2   :  { %784 = vmax.xlane.f32.xlu0 %v1920_v43  ;;  %v1925_v48 = vsel %vm749_vm0, %v589_v39, -inf }
 0x1d6   :  { %v1384_v49 = vpop.f32.mrb[18].mxu1  ;;  %782 = vmax.xlane.f32.xlu0 %v1925_v48 }
 0x1d7   :  { %v604_v50 = vadd.f32 %v1384_v49, %v1913_v15  ;;  %v598_v51 = vpop.f32.mrb[19].mxu1 }
 0x1d8   :  { %v599_v52 = vadd.f32 %v1913_v15, %v598_v51 }
 0x1d9   :  { %v1932_v53 = vsel %vm749_vm0, %v604_v50, -inf }
 0x1da   :  { %788 = vmax.xlane.f32.xlu1 %v1932_v53  ;;  %v1937_v54 = vsel %vm749_vm0, %v599_v52, -inf }
 0x1de   :  { %v1387_v55 = vpop.f32.mrb[20].mxu1  ;;  %786 = vmax.xlane.f32.xlu1 %v1937_v54 }
 0x1df   :  { %v614_v56 = vadd.f32 %v1387_v55, %v1913_v15  ;;  %v608_v57 = vpop.f32.mrb[21].mxu1 }
 0x1e0   :  { %v609_v58 = vadd.f32 %v1913_v15, %v608_v57 }
 0x1e1   :  { %v1944_v59 = vsel %vm749_vm0, %v614_v56, -inf }
 0x1e2   :  { %792 = vmax.xlane.f32.xlu1 %v1944_v59  ;;  %v1949_v60 = vsel %vm749_vm0, %v609_v58, -inf }
 0x1e3   :  { %790 = vmax.xlane.f32.xlu0 %v1949_v60 }
 0x1e6   :  { %v1390_v61 = vpop.f32.mrb[22].mxu1 }
 0x1e7   :  { %v624_v62 = vadd.f32 %v1390_v61, %v1913_v15  ;;  %v618_v63 = vpop.f32.mrb[23].mxu1 }
 0x1e8   :  { %v619_v0 = vadd.f32 %v1913_v15, %v618_v63 }
 0x1e9   :  { %v1956_v1 = vsel %vm749_vm0, %v624_v62, -inf }
 0x1ea   :  { %796 = vmax.xlane.f32.xlu1 %v1956_v1  ;;  %v1961_v2 = vsel %vm749_vm0, %v619_v0, -inf }
 0x1eb   :  { %794 = vmax.xlane.f32.xlu0 %v1961_v2 }
 0x1ee   :  { %v1393_v3 = vpop.f32.mrb[24].mxu1 }
 0x1ef   :  { %v634_v4 = vadd.f32 %v1393_v3, %v1913_v15  ;;  %v628_v5 = vpop.f32.mrb[25].mxu1 }
 0x1f0   :  { %v629_v6 = vadd.f32 %v1913_v15, %v628_v5 }
 0x1f1   :  { %v1968_v7 = vsel %vm749_vm0, %v634_v4, -inf }
 0x1f2   :  { %800 = vmax.xlane.f32.xlu1 %v1968_v7  ;;  %v1973_v8 = vsel %vm749_vm0, %v629_v6, -inf }
 0x1f3   :  { %798 = vmax.xlane.f32.xlu0 %v1973_v8 }
 0x1f6   :  { %v1396_v9 = vpop.f32.mrb[26].mxu1 }
 0x1f7   :  { %v644_v10 = vadd.f32 %v1396_v9, %v1913_v15  ;;  %v638_v11 = vpop.f32.mrb[27].mxu1 }
 0x1f8   :  { %v639_v12 = vadd.f32 %v1913_v15, %v638_v11 }
 0x1f9   :  { %v1980_v13 = vsel %vm749_vm0, %v644_v10, -inf }
 0x1fa   :  { %804 = vmax.xlane.f32.xlu1 %v1980_v13  ;;  %v1985_v14 = vsel %vm749_vm0, %v639_v12, -inf }
 0x1fb   :  { %802 = vmax.xlane.f32.xlu0 %v1985_v14 }
 0x1fe   :  { %v1399_v16 = vpop.f32.mrb[28].mxu1 }
 0x1ff   :  { %v654_v17 = vadd.f32 %v1399_v16, %v1913_v15  ;;  %v648_v18 = vpop.f32.mrb[29].mxu1 }
 0x200   :  { %v649_v20 = vadd.f32 %v1913_v15, %v648_v18 }
 0x201   :  { %v1992_v21 = vsel %vm749_vm0, %v654_v17, -inf }
 0x202   :  { %808 = vmax.xlane.f32.xlu1 %v1992_v21  ;;  %v1997_v22 = vsel %vm749_vm0, %v649_v20, -inf }
 0x203   :  { %806 = vmax.xlane.f32.xlu0 %v1997_v22 }
 0x206   :  { %v1402_v23 = vpop.f32.mrb[30].mxu1 }
 0x207   :  { %v664_v24 = vadd.f32 %v1402_v23, %v1913_v15  ;;  %v658_v25 = vpop.f32.mrb[31].mxu1 }
 0x208   :  { %v659_v26 = vadd.f32 %v1913_v15, %v658_v25 }
 0x209   :  { %v2004_v28 = vsel %vm749_vm0, %v664_v24, -inf }
 0x20a   :  { %812 = vmax.xlane.f32.xlu1 %v2004_v28  ;;  %v2009_v29 = vsel %vm749_vm0, %v659_v26, -inf }
 0x20b   :  { %810 = vmax.xlane.f32.xlu0 %v2009_v29 }
 0x20e   :  { %v1405_v30 = vpop.f32.mrb[32].mxu1 }
 0x20f   :  { %v674_v32 = vadd.f32 %v1405_v30, %v1913_v15  ;;  %v668_v33 = vpop.f32.mrb[33].mxu1 }
 0x210   :  { %v669_v34 = vadd.f32 %v1913_v15, %v668_v33 }
 0x211   :  { %v2016_v35 = vsel %vm749_vm0, %v674_v32, -inf }
 0x212   :  { %816 = vmax.xlane.f32.xlu1 %v2016_v35  ;;  %v2021_v36 = vsel %vm749_vm0, %v669_v34, -inf }
 0x213   :  { %814 = vmax.xlane.f32.xlu0 %v2021_v36 }
 0x216   :  { %v1408_v37 = vpop.f32.mrb[34].mxu1 }
 0x217   :  { %v684_v38 = vadd.f32 %v1408_v37, %v1913_v15  ;;  %v678_v40 = vpop.f32.mrb[35].mxu1 }
 0x218   :  { %v679_v41 = vadd.f32 %v1913_v15, %v678_v40 }
 0x219   :  { %v2028_v42 = vsel %vm749_vm0, %v684_v38, -inf }
 0x21a   :  { %820 = vmax.xlane.f32.xlu1 %v2028_v42  ;;  %v2033_v44 = vsel %vm749_vm0, %v679_v41, -inf }
 0x21b   :  { %818 = vmax.xlane.f32.xlu0 %v2033_v44 }
 0x21e   :  { %v1411_v45 = vpop.f32.mrb[36].mxu1 }
 0x21f   :  { %v694_v46 = vadd.f32 %v1411_v45, %v1913_v15  ;;  %v688_v19 = vpop.f32.mrb[37].mxu1 }
 0x220   :  { %v689_v27 = vadd.f32 %v1913_v15, %v688_v19 }
 0x221   :  { %v2040_v31 = vsel %vm749_vm0, %v694_v46, -inf }
 0x222   :  { %824 = vmax.xlane.f32.xlu1 %v2040_v31  ;;  %v2045_v39 = vsel %vm749_vm0, %v689_v27, -inf }
 0x223   :  { %822 = vmax.xlane.f32.xlu0 %v2045_v39 }
 0x226   :  { %v1414_v49 = vpop.f32.mrb[38].mxu1 }
 0x227   :  { %v704_v50 = vadd.f32 %v1414_v49, %v1913_v15  ;;  %v698_v51 = vpop.f32.mrb[39].mxu1 }
 0x228   :  { %v699_v52 = vadd.f32 %v1913_v15, %v698_v51 }
 0x229   :  { %v2052_v55 = vsel %vm749_vm0, %v704_v50, -inf }
 0x22a   :  { %v1417_v56 = vpop.f32.mrb[40].mxu1  ;;  %828 = vmax.xlane.f32.xlu1 %v2052_v55  ;;  %v2057_v57 = vsel %vm749_vm0, %v699_v52, -inf }
 0x22b   :  { %v714_v58 = vadd.f32 %v1417_v56, %v1913_v15  ;;  %v708_v61 = vpop.f32.mrb[41].mxu1  ;;  %826 = vmax.xlane.f32.xlu0 %v2057_v57 }
 0x22c   :  { %v709_v62 = vadd.f32 %v1913_v15, %v708_v61 }
 0x22d   :  { %v2064_v63 = vsel %vm749_vm0, %v714_v58, -inf }
 0x22e   :  { %v1420_v0 = vpop.f32.mrb[42].mxu1  ;;  %832 = vmax.xlane.f32.xlu1 %v2064_v63  ;;  %v2069_v3 = vsel %vm749_vm0, %v709_v62, -inf }
 0x22f   :  { %v724_v4 = vadd.f32 %v1420_v0, %v1913_v15  ;;  %v718_v5 = vpop.f32.mrb[43].mxu1  ;;  %830 = vmax.xlane.f32.xlu0 %v2069_v3 }
 0x230   :  { %v719_v6 = vadd.f32 %v1913_v15, %v718_v5 }
 0x231   :  { %v2076_v9 = vsel %vm749_vm0, %v724_v4, -inf }
 0x232   :  { %v1423_v10 = vpop.f32.mrb[44].mxu1  ;;  %836 = vmax.xlane.f32.xlu1 %v2076_v9  ;;  %v2081_v11 = vsel %vm749_vm0, %v719_v6, -inf }
 0x233   :  { %v734_v12 = vadd.f32 %v1423_v10, %v1913_v15  ;;  %v728_v16 = vpop.f32.mrb[45].mxu1  ;;  %834 = vmax.xlane.f32.xlu0 %v2081_v11 }
 0x234   :  { %v729_v17 = vadd.f32 %v1913_v15, %v728_v16 }
 0x235   :  { %v2088_v18 = vsel %vm749_vm0, %v734_v12, -inf }
 0x236   :  { %v1426_v20 = vpop.f32.mrb[46].mxu1  ;;  %840 = vmax.xlane.f32.xlu1 %v2088_v18  ;;  %v2093_v23 = vsel %vm749_vm0, %v729_v17, -inf }
 0x237   :  { %v744_v24 = vadd.f32 %v1426_v20, %v1913_v15  ;;  %v738_v25 = vpop.f32.mrb[47].mxu1  ;;  %838 = vmax.xlane.f32.xlu0 %v2093_v23 }
 0x238   :  { %v739_v26 = vadd.f32 %v1913_v15, %v738_v25 }
 0x239   :  { %v2100_v30 = vsel %vm749_vm0, %v744_v24, -inf }
 0x23a   :  { %844 = vmax.xlane.f32.xlu1 %v2100_v30  ;;  %v2105_v32 = vsel %vm749_vm0, %v739_v26, -inf }
 0x23b   :  { %842 = vmax.xlane.f32.xlu0 %v2105_v32 }
 0x25f   :  { %v785_v33 = vpop.xlane.xlu0 %784 }
 0x260   :  { %v2109_v34 = vsub.f32 %v1920_v43, %v785_v33 }
 0x262   :  { %v880_v37 = vmul.f32 1.442695, %v2109_v34 }
 0x263   :  { %v783_v38 = vpop.xlane.xlu0 %782 }
 0x264   :  { %1539 = vpow2.f32 %v880_v37  ;;  %v2113_v15 = vsub.f32 %v1925_v48, %v783_v38 }
 0x266   :  { %v878_v40 = vmul.f32 1.442695, %v2113_v15 }
 0x267   :  { %v789_v41 = vpop.xlane.xlu1 %788 }
 0x268   :  { %1541 = vpow2.f32 %v878_v40  ;;  %v2117_v47 = vsub.f32 %v1932_v53, %v789_v41 }
 0x26a   :  { %v884_v45 = vmul.f32 1.442695, %v2117_v47 }
 0x26b   :  { %v787_v46 = vpop.xlane.xlu1 %786 }
 0x26c   :  { %1543 = vpow2.f32 %v884_v45  ;;  %v2121_v43 = vsub.f32 %v1937_v54, %v787_v46 }
 0x26e   :  { %v1540_v19 = vpop.eup %1539  ;;  %v882_v27 = vmul.f32 1.442695, %v2121_v43 }
 0x26f   :  { %944 = vadd.xlane.f32.xlu1 %v1540_v19  ;;  %v793_v48 = vpop.xlane.xlu1 %792 }
 0x270   :  { %1545 = vpow2.f32 %v882_v27  ;;  %v2125_v49 = vsub.f32 %v1944_v59, %v793_v48  ;;  %v791_v50 = vpop.xlane.xlu0 %790 }
 0x271   :  { %v2128_v53 = vsub.f32 %v1949_v60, %v791_v50 }
 0x272   :  { %v1542_v51 = vpop.eup %1541  ;;  %v888_v52 = vmul.f32 1.442695, %v2125_v49 }
 0x273   :  { %v886_v56 = vmul.f32 1.442695, %v2128_v53  ;;  %942 = vadd.xlane.f32.xlu0 %v1542_v51 }
 0x274   :  { %1547 = vpow2.f32 %v888_v52 }
 0x275   :  { %1549 = vpow2.f32 %v886_v56 }
 0x276   :  { %v1544_v54 = vpop.eup %1543 }
 0x277   :  { %948 = vadd.xlane.f32.xlu1 %v1544_v54  ;;  %v797_v58 = vpop.xlane.xlu1 %796 }
 0x278   :  { %v2133_v61 = vsub.f32 %v1956_v1, %v797_v58  ;;  %v795_v59 = vpop.xlane.xlu0 %794 }
 0x279   :  { %v2136_v62 = vsub.f32 %v1961_v2, %v795_v59 }
 0x27a   :  { %v1546_v60 = vpop.eup %1545  ;;  %v892_v0 = vmul.f32 1.442695, %v2133_v61 }
 0x27b   :  { %v890_v4 = vmul.f32 1.442695, %v2136_v62  ;;  %946 = vadd.xlane.f32.xlu0 %v1546_v60 }
 0x27c   :  { %1551 = vpow2.f32 %v892_v0 }
 0x27d   :  { %1553 = vpow2.f32 %v890_v4 }
 0x27e   :  { %v1548_v5 = vpop.eup %1547 }
 0x27f   :  { %v1550_v6 = vpop.eup %1549  ;;  %952 = vadd.xlane.f32.xlu1 %v1548_v5  ;;  %v801_v10 = vpop.xlane.xlu1 %800 }
 0x280   :  { %v2141_v12 = vsub.f32 %v1968_v7, %v801_v10  ;;  %950 = vadd.xlane.f32.xlu0 %v1550_v6  ;;  %v799_v1 = vpop.xlane.xlu0 %798 }
 0x281   :  { %v2144_v2 = vsub.f32 %v1973_v8, %v799_v1 }
 0x282   :  { %v896_v16 = vmul.f32 1.442695, %v2141_v12 }
 0x283   :  { %v894_v17 = vmul.f32 1.442695, %v2144_v2 }
 0x284   :  { %1555 = vpow2.f32 %v896_v16 }
 0x285   :  { %1557 = vpow2.f32 %v894_v17 }
 0x286   :  { %v1552_v20 = vpop.eup %1551 }
 0x287   :  { %v1554_v24 = vpop.eup %1553  ;;  %956 = vadd.xlane.f32.xlu1 %v1552_v20  ;;  %v805_v25 = vpop.xlane.xlu1 %804 }
 0x288   :  { %v2149_v26 = vsub.f32 %v1980_v13, %v805_v25  ;;  %954 = vadd.xlane.f32.xlu0 %v1554_v24  ;;  %v803_v7 = vpop.xlane.xlu0 %802 }
 0x289   :  { %v2152_v33 = vsub.f32 %v1985_v14, %v803_v7 }
 0x28a   :  { %v900_v8 = vmul.f32 1.442695, %v2149_v26 }
 0x28b   :  { %v898_v37 = vmul.f32 1.442695, %v2152_v33 }
 0x28c   :  { %1559 = vpow2.f32 %v900_v8 }
 0x28d   :  { %1561 = vpow2.f32 %v898_v37 }
 0x28e   :  { %v1556_v38 = vpop.eup %1555 }
 0x28f   :  { %v1558_v40 = vpop.eup %1557  ;;  %960 = vadd.xlane.f32.xlu1 %v1556_v38  ;;  %v809_v41 = vpop.xlane.xlu1 %808 }
 0x290   :  { %v2157_v45 = vsub.f32 %v1992_v21, %v809_v41  ;;  %958 = vadd.xlane.f32.xlu0 %v1558_v40  ;;  %v807_v13 = vpop.xlane.xlu0 %806 }
 0x291   :  { %v2160_v46 = vsub.f32 %v1997_v22, %v807_v13 }
 0x292   :  { %v904_v14 = vmul.f32 1.442695, %v2157_v45 }
 0x293   :  { %v902_v19 = vmul.f32 1.442695, %v2160_v46 }
 0x294   :  { %1563 = vpow2.f32 %v904_v14 }
 0x295   :  { %1565 = vpow2.f32 %v902_v19 }
 0x296   :  { %v1560_v27 = vpop.eup %1559 }
 0x297   :  { %v1562_v48 = vpop.eup %1561  ;;  %964 = vadd.xlane.f32.xlu1 %v1560_v27  ;;  %v813_v50 = vpop.xlane.xlu1 %812 }
 0x298   :  { %v2165_v51 = vsub.f32 %v2004_v28, %v813_v50  ;;  %962 = vadd.xlane.f32.xlu0 %v1562_v48  ;;  %v811_v21 = vpop.xlane.xlu0 %810 }
 0x299   :  { %v2168_v52 = vsub.f32 %v2009_v29, %v811_v21 }
 0x29a   :  { %v908_v22 = vmul.f32 1.442695, %v2165_v51 }
 0x29b   :  { %v906_v56 = vmul.f32 1.442695, %v2168_v52 }
 0x29c   :  { %1567 = vpow2.f32 %v908_v22 }
 0x29d   :  { %1569 = vpow2.f32 %v906_v56 }
 0x29e   :  { %v1564_v54 = vpop.eup %1563 }
 0x29f   :  { %v1566_v58 = vpop.eup %1565  ;;  %968 = vadd.xlane.f32.xlu1 %v1564_v54  ;;  %v817_v59 = vpop.xlane.xlu1 %816 }
 0x2a0   :  { %v2173_v60 = vsub.f32 %v2016_v35, %v817_v59  ;;  %966 = vadd.xlane.f32.xlu0 %v1566_v58  ;;  %v815_v28 = vpop.xlane.xlu0 %814 }
 0x2a1   :  { %v2176_v0 = vsub.f32 %v2021_v36, %v815_v28 }
 0x2a2   :  { %v912_v29 = vmul.f32 1.442695, %v2173_v60 }
 0x2a3   :  { %v910_v4 = vmul.f32 1.442695, %v2176_v0 }
 0x2a4   :  { %1571 = vpow2.f32 %v912_v29 }
 0x2a5   :  { %1573 = vpow2.f32 %v910_v4 }
 0x2a6   :  { %v1568_v5 = vpop.eup %1567 }
 0x2a7   :  { %v1570_v6 = vpop.eup %1569  ;;  %972 = vadd.xlane.f32.xlu1 %v1568_v5  ;;  %v821_v10 = vpop.xlane.xlu1 %820 }
 0x2a8   :  { %v2181_v1 = vsub.f32 %v2028_v42, %v821_v10  ;;  %970 = vadd.xlane.f32.xlu0 %v1570_v6  ;;  %v819_v35 = vpop.xlane.xlu0 %818 }
 0x2a9   :  { %v2184_v16 = vsub.f32 %v2033_v44, %v819_v35 }
 0x2aa   :  { %v916_v36 = vmul.f32 1.442695, %v2181_v1 }
 0x2ab   :  { %v914_v17 = vmul.f32 1.442695, %v2184_v16 }
 0x2ac   :  { %1575 = vpow2.f32 %v916_v36 }
 0x2ad   :  { %1577 = vpow2.f32 %v914_v17 }
 0x2ae   :  { %v1572_v20 = vpop.eup %1571 }
 0x2af   :  { %v1574_v24 = vpop.eup %1573  ;;  %976 = vadd.xlane.f32.xlu1 %v1572_v20  ;;  %v825_v25 = vpop.xlane.xlu1 %824 }
 0x2b0   :  { %v2189_v7 = vsub.f32 %v2040_v31, %v825_v25  ;;  %974 = vadd.xlane.f32.xlu0 %v1574_v24  ;;  %v823_v42 = vpop.xlane.xlu0 %822 }
 0x2b1   :  { %v2192_v8 = vsub.f32 %v2045_v39, %v823_v42 }
 0x2b2   :  { %v920_v44 = vmul.f32 1.442695, %v2189_v7 }
 0x2b3   :  { %v918_v37 = vmul.f32 1.442695, %v2192_v8 }
 0x2b4   :  { %1579 = vpow2.f32 %v920_v44 }
 0x2b5   :  { %1581 = vpow2.f32 %v918_v37 }
 0x2b6   :  { %v1576_v38 = vpop.eup %1575 }
 0x2b7   :  { %v1578_v40 = vpop.eup %1577  ;;  %980 = vadd.xlane.f32.xlu1 %v1576_v38  ;;  %v829_v41 = vpop.xlane.xlu1 %828 }
 0x2b8   :  { %v2197_v13 = vsub.f32 %v2052_v55, %v829_v41  ;;  %978 = vadd.xlane.f32.xlu0 %v1578_v40  ;;  %v827_v31 = vpop.xlane.xlu0 %826 }
 0x2b9   :  { %v2200_v14 = vsub.f32 %v2057_v57, %v827_v31 }
 0x2ba   :  { %v924_v39 = vmul.f32 1.442695, %v2197_v13 }
 0x2bb   :  { %v922_v19 = vmul.f32 1.442695, %v2200_v14  ;;  %v833_v27 = vpop.xlane.xlu1 %832 }
 0x2bc   :  { %1583 = vpow2.f32 %v924_v39  ;;  %v2205_v48 = vsub.f32 %v2064_v63, %v833_v27  ;;  %v831_v50 = vpop.xlane.xlu0 %830 }
 0x2bd   :  { %1585 = vpow2.f32 %v922_v19  ;;  %v2208_v21 = vsub.f32 %v2069_v3, %v831_v50 }
 0x2be   :  { %v1580_v55 = vpop.eup %1579  ;;  %v928_v22 = vmul.f32 1.442695, %v2205_v48 }
 0x2bf   :  { %v1582_v56 = vpop.eup %1581  ;;  %v926_v57 = vmul.f32 1.442695, %v2208_v21  ;;  %984 = vadd.xlane.f32.xlu1 %v1580_v55  ;;  %v837_v54 = vpop.xlane.xlu1 %836 }
 0x2c0   :  { %1587 = vpow2.f32 %v928_v22  ;;  %v2213_v58 = vsub.f32 %v2076_v9, %v837_v54  ;;  %982 = vadd.xlane.f32.xlu0 %v1582_v56  ;;  %v835_v63 = vpop.xlane.xlu0 %834 }
 0x2c1   :  { %1589 = vpow2.f32 %v926_v57  ;;  %v2216_v59 = vsub.f32 %v2081_v11, %v835_v63 }
 0x2c2   :  { %v932_v3 = vmul.f32 1.442695, %v2213_v58 }
 0x2c3   :  { %v930_v28 = vmul.f32 1.442695, %v2216_v59  ;;  %v841_v29 = vpop.xlane.xlu1 %840 }
 0x2c4   :  { %1591 = vpow2.f32 %v932_v3  ;;  %v2221_v4 = vsub.f32 %v2088_v18, %v841_v29  ;;  %v839_v5 = vpop.xlane.xlu0 %838 }
 0x2c5   :  { %1593 = vpow2.f32 %v930_v28  ;;  %v2224_v9 = vsub.f32 %v2093_v23, %v839_v5 }
 0x2c6   :  { %v1584_v6 = vpop.eup %1583  ;;  %v936_v10 = vmul.f32 1.442695, %v2221_v4 }
 0x2c7   :  { %v1586_v35 = vpop.eup %1585  ;;  %v934_v11 = vmul.f32 1.442695, %v2224_v9  ;;  %988 = vadd.xlane.f32.xlu1 %v1584_v6  ;;  %v845_v36 = vpop.xlane.xlu1 %844 }
 0x2c8   :  { %1595 = vpow2.f32 %v936_v10  ;;  %v2229_v17 = vsub.f32 %v2100_v30, %v845_v36  ;;  %986 = vadd.xlane.f32.xlu0 %v1586_v35  ;;  %v843_v18 = vpop.xlane.xlu0 %842 }
 0x2c9   :  { %1597 = vpow2.f32 %v934_v11  ;;  %v2232_v20 = vsub.f32 %v2105_v32, %v843_v18 }
 0x2ca   :  { %v1588_v23 = vpop.eup %1587  ;;  %v940_v24 = vmul.f32 1.442695, %v2229_v17 }
 0x2cb   :  { %v1590_v25 = vpop.eup %1589  ;;  %v938_v42 = vmul.f32 1.442695, %v2232_v20  ;;  %992 = vadd.xlane.f32.xlu1 %v1588_v23 }
 0x2cc   :  { %1599 = vpow2.f32 %v940_v24  ;;  %990 = vadd.xlane.f32.xlu0 %v1590_v25 }
 0x2cd   :  { %1601 = vpow2.f32 %v938_v42 }
 0x2ce   :  { %v1592_v44 = vpop.eup %1591 }
 0x2cf   :  { %v1594_v37 = vpop.eup %1593  ;;  %996 = vadd.xlane.f32.xlu1 %v1592_v44 }
 0x2d0   :  { %994 = vadd.xlane.f32.xlu0 %v1594_v37 }
 0x2d2   :  { %v1596_v30 = vpop.eup %1595 }
 0x2d3   :  { %v1598_v38 = vpop.eup %1597  ;;  %1000 = vadd.xlane.f32.xlu1 %v1596_v30 }
 0x2d4   :  { %998 = vadd.xlane.f32.xlu0 %v1598_v38 }
 0x2d6   :  { %v1600_v32 = vpop.eup %1599 }
 0x2d7   :  { %v1602_v40 = vpop.eup %1601  ;;  %1004 = vadd.xlane.f32.xlu1 %v1600_v32 }
 0x2d8   :  { %1002 = vadd.xlane.f32.xlu0 %v1602_v40 }
 0x2fc   :  { %v945_v41 = vpop.xlane.xlu1 %944 }
 0x2fd   :  { %1603 = vlog2.f32 %v945_v41 }
 0x300   :  { %v943_v31 = vpop.xlane.xlu0 %942 }
 0x301   :  { %1605 = vlog2.f32 %v943_v31 }
 0x304   :  { %v949_v39 = vpop.xlane.xlu1 %948 }
 0x305   :  { %1607 = vlog2.f32 %v949_v39 }
 0x307   :  { %v1604_v19 = vpop.eup %1603 }
 0x308   :  { %v1009_v27 = vmul.f32 0.6931472, %v1604_v19  ;;  %v947_v50 = vpop.xlane.xlu0 %946 }
 0x309   :  { %1609 = vlog2.f32 %v947_v50 }
 0x30a   :  { %v1071_v55 = vsub.f32 %v2109_v34, %v1009_v27 }
 0x30b   :  { %v1606_v22 = vpop.eup %1605 }
 0x30c   :  { %1103 = vst [vmem:[%s2368_s4 + $0x8] sm:$0xff] %v1071_v55  ;;  %v1007_v56 = vmul.f32 0.6931472, %v1606_v22  ;;  %v953_v57 = vpop.xlane.xlu1 %952 }
 0x30d   :  { %1611 = vlog2.f32 %v953_v57  ;;  %v951_v54 = vpop.xlane.xlu0 %950 }
 0x30e   :  { %v1070_v63 = vsub.f32 %v2113_v15, %v1007_v56  ;;  %1613 = vlog2.f32 %v951_v54 }
 0x30f   :  { %v1608_v3 = vpop.eup %1607 }
 0x310   :  { %1102 = vst [vmem:[%s2368_s4] sm:$0xff] %v1070_v63  ;;  %v1013_v28 = vmul.f32 0.6931472, %v1608_v3 }
 0x312   :  { %v1073_v34 = vsub.f32 %v2117_v47, %v1013_v28 }
 0x313   :  { %v1610_v29 = vpop.eup %1609 }
 0x314   :  { %1105 = vst [vmem:[%s2368_s4 + $0x18] sm:$0xff] %v1073_v34  ;;  %v1011_v5 = vmul.f32 0.6931472, %v1610_v29  ;;  %v957_v6 = vpop.xlane.xlu1 %956 }
 0x315   :  { %1615 = vlog2.f32 %v957_v6  ;;  %v955_v10 = vpop.xlane.xlu0 %954 }
 0x316   :  { %v1072_v15 = vsub.f32 %v2121_v43, %v1011_v5  ;;  %1617 = vlog2.f32 %v955_v10 }
 0x317   :  { %v1612_v35 = vpop.eup %1611 }
 0x318   :  { %v1614_v11 = vpop.eup %1613  ;;  %1104 = vst [vmem:[%s2368_s4 + $0x10] sm:$0xff] %v1072_v15  ;;  %v1017_v36 = vmul.f32 0.6931472, %v1612_v35 }
 0x319   :  { %v1015_v47 = vmul.f32 0.6931472, %v1614_v11 }
 0x31a   :  { %v1075_v18 = vsub.f32 %v2125_v49, %v1017_v36 }
 0x31b   :  { %v1074_v23 = vsub.f32 %v2128_v53, %v1015_v47 }
 0x31c   :  { %1107 = vst [vmem:[%s2368_s4 + $0x28] sm:$0xff] %v1075_v18  ;;  %v961_v24 = vpop.xlane.xlu1 %960 }
 0x31d   :  { %1106 = vst [vmem:[%s2368_s4 + $0x20] sm:$0xff] %v1074_v23  ;;  %1619 = vlog2.f32 %v961_v24  ;;  %v959_v43 = vpop.xlane.xlu0 %958 }
 0x31e   :  { %1621 = vlog2.f32 %v959_v43 }
 0x31f   :  { %v1616_v25 = vpop.eup %1615 }
 0x320   :  { %v1618_v42 = vpop.eup %1617  ;;  %v1021_v44 = vmul.f32 0.6931472, %v1616_v25 }
 0x321   :  { %v1019_v37 = vmul.f32 0.6931472, %v1618_v42 }
 0x322   :  { %v1077_v49 = vsub.f32 %v2133_v61, %v1021_v44 }
 0x323   :  { %v1076_v53 = vsub.f32 %v2136_v62, %v1019_v37 }
 0x324   :  { %1109 = vst [vmem:[%s2368_s4 + $0x38] sm:$0xff] %v1077_v49  ;;  %v965_v30 = vpop.xlane.xlu1 %964 }
 0x325   :  { %1108 = vst [vmem:[%s2368_s4 + $0x30] sm:$0xff] %v1076_v53  ;;  %1623 = vlog2.f32 %v965_v30  ;;  %v963_v38 = vpop.xlane.xlu0 %962 }
 0x326   :  { %1625 = vlog2.f32 %v963_v38 }
 0x327   :  { %v1620_v32 = vpop.eup %1619 }
 0x328   :  { %v1622_v40 = vpop.eup %1621  ;;  %v1025_v41 = vmul.f32 0.6931472, %v1620_v32 }
 0x329   :  { %v1023_v31 = vmul.f32 0.6931472, %v1622_v40 }
 0x32a   :  { %v1079_v61 = vsub.f32 %v2141_v12, %v1025_v41 }
 0x32b   :  { %v1078_v62 = vsub.f32 %v2144_v2, %v1023_v31 }
 0x32c   :  { %1111 = vst [vmem:[%s2368_s4 + $0x48] sm:$0xff] %v1079_v61  ;;  %v969_v39 = vpop.xlane.xlu1 %968 }
 0x32d   :  { %1110 = vst [vmem:[%s2368_s4 + $0x40] sm:$0xff] %v1078_v62  ;;  %1627 = vlog2.f32 %v969_v39  ;;  %v967_v19 = vpop.xlane.xlu0 %966 }
 0x32e   :  { %1629 = vlog2.f32 %v967_v19 }
 0x32f   :  { %v1624_v27 = vpop.eup %1623 }
 0x330   :  { %v1626_v50 = vpop.eup %1625  ;;  %v1029_v55 = vmul.f32 0.6931472, %v1624_v27 }
 0x331   :  { %v1027_v22 = vmul.f32 0.6931472, %v1626_v50 }
 0x332   :  { %v1081_v12 = vsub.f32 %v2149_v26, %v1029_v55 }
 0x333   :  { %v1080_v2 = vsub.f32 %v2152_v33, %v1027_v22 }
 0x334   :  { %1113 = vst [vmem:[%s2368_s4 + $0x58] sm:$0xff] %v1081_v12  ;;  %v973_v56 = vpop.xlane.xlu1 %972 }
 0x335   :  { %1112 = vst [vmem:[%s2368_s4 + $0x50] sm:$0xff] %v1080_v2  ;;  %1631 = vlog2.f32 %v973_v56  ;;  %v971_v57 = vpop.xlane.xlu0 %970 }
 0x336   :  { %1633 = vlog2.f32 %v971_v57 }
 0x337   :  { %v1628_v54 = vpop.eup %1627 }
 0x338   :  { %v1630_v63 = vpop.eup %1629  ;;  %v1033_v3 = vmul.f32 0.6931472, %v1628_v54 }
 0x339   :  { %v1031_v28 = vmul.f32 0.6931472, %v1630_v63 }
 0x33a   :  { %v1083_v26 = vsub.f32 %v2157_v45, %v1033_v3 }
 0x33b   :  { %v1082_v33 = vsub.f32 %v2160_v46, %v1031_v28 }
 0x33c   :  { %1115 = vst [vmem:[%s2368_s4 + $0x68] sm:$0xff] %v1083_v26  ;;  %v977_v34 = vpop.xlane.xlu1 %976 }
 0x33d   :  { %1114 = vst [vmem:[%s2368_s4 + $0x60] sm:$0xff] %v1082_v33  ;;  %1635 = vlog2.f32 %v977_v34  ;;  %v975_v29 = vpop.xlane.xlu0 %974 }
 0x33e   :  { %1637 = vlog2.f32 %v975_v29 }
 0x33f   :  { %v1632_v5 = vpop.eup %1631 }
 0x340   :  { %v1634_v6 = vpop.eup %1633  ;;  %v1037_v10 = vmul.f32 0.6931472, %v1632_v5 }
 0x341   :  { %v1035_v15 = vmul.f32 0.6931472, %v1634_v6 }
 0x342   :  { %v1085_v45 = vsub.f32 %v2165_v51, %v1037_v10 }
 0x343   :  { %v1084_v46 = vsub.f32 %v2168_v52, %v1035_v15 }
 0x344   :  { %1117 = vst [vmem:[%s2368_s4 + $0x78] sm:$0xff] %v1085_v45  ;;  %v981_v35 = vpop.xlane.xlu1 %980 }
 0x345   :  { %1116 = vst [vmem:[%s2368_s4 + $0x70] sm:$0xff] %v1084_v46  ;;  %1639 = vlog2.f32 %v981_v35  ;;  %v979_v11 = vpop.xlane.xlu0 %978 }
 0x346   :  { %1641 = vlog2.f32 %v979_v11 }
 0x347   :  { %v1636_v36 = vpop.eup %1635 }
 0x348   :  { %v1638_v47 = vpop.eup %1637  ;;  %v1041_v18 = vmul.f32 0.6931472, %v1636_v36 }
 0x349   :  { %v1039_v23 = vmul.f32 0.6931472, %v1638_v47 }
 0x34a   :  { %v1087_v51 = vsub.f32 %v2173_v60, %v1041_v18 }
 0x34b   :  { %v1086_v52 = vsub.f32 %v2176_v0, %v1039_v23 }
 0x34c   :  { %1119 = vst [vmem:[%s2368_s4 + $0x88] sm:$0xff] %v1087_v51  ;;  %v985_v24 = vpop.xlane.xlu1 %984 }
 0x34d   :  { %1118 = vst [vmem:[%s2368_s4 + $0x80] sm:$0xff] %v1086_v52  ;;  %1643 = vlog2.f32 %v985_v24  ;;  %v983_v43 = vpop.xlane.xlu0 %982 }
 0x34e   :  { %1645 = vlog2.f32 %v983_v43 }
 0x34f   :  { %v1640_v25 = vpop.eup %1639 }
 0x350   :  { %v1642_v42 = vpop.eup %1641  ;;  %v1045_v44 = vmul.f32 0.6931472, %v1640_v25 }
 0x351   :  { %v1043_v37 = vmul.f32 0.6931472, %v1642_v42 }
 0x352   :  { %v1089_v60 = vsub.f32 %v2181_v1, %v1045_v44 }
 0x353   :  { %v1088_v0 = vsub.f32 %v2184_v16, %v1043_v37 }
 0x354   :  { %1121 = vst [vmem:[%s2368_s4 + $0x98] sm:$0xff] %v1089_v60  ;;  %v989_v49 = vpop.xlane.xlu1 %988 }
 0x355   :  { %1120 = vst [vmem:[%s2368_s4 + $0x90] sm:$0xff] %v1088_v0  ;;  %1647 = vlog2.f32 %v989_v49  ;;  %v987_v53 = vpop.xlane.xlu0 %986 }
 0x356   :  { %1649 = vlog2.f32 %v987_v53 }
 0x357   :  { %v1644_v30 = vpop.eup %1643 }
 0x358   :  { %v1646_v38 = vpop.eup %1645  ;;  %v1049_v32 = vmul.f32 0.6931472, %v1644_v30  ;;  %v993_v40 = vpop.xlane.xlu1 %992 }
 0x359   :  { %v1047_v41 = vmul.f32 0.6931472, %v1646_v38  ;;  %1651 = vlog2.f32 %v993_v40  ;;  %v991_v1 = vpop.xlane.xlu0 %990 }
 0x35a   :  { %v1091_v16 = vsub.f32 %v2189_v7, %v1049_v32  ;;  %1653 = vlog2.f32 %v991_v1 }
 0x35b   :  { %v1090_v31 = vsub.f32 %v2192_v8, %v1047_v41 }
 0x35c   :  { %1123 = vst [vmem:[%s2368_s4 + $0xa8] sm:$0xff] %v1091_v16  ;;  %v997_v61 = vpop.xlane.xlu1 %996 }
 0x35d   :  { %1122 = vst [vmem:[%s2368_s4 + $0xa0] sm:$0xff] %v1090_v31  ;;  %1655 = vlog2.f32 %v997_v61  ;;  %v995_v62 = vpop.xlane.xlu0 %994 }
 0x35e   :  { %1657 = vlog2.f32 %v995_v62 }
 0x35f   :  { %v1648_v39 = vpop.eup %1647 }
 0x360   :  { %v1650_v19 = vpop.eup %1649  ;;  %v1053_v27 = vmul.f32 0.6931472, %v1648_v39  ;;  %v1001_v50 = vpop.xlane.xlu1 %1000 }
 0x361   :  { %v1051_v7 = vmul.f32 0.6931472, %v1650_v19  ;;  %1659 = vlog2.f32 %v1001_v50  ;;  %v999_v55 = vpop.xlane.xlu0 %998 }
 0x362   :  { %v1093_v8 = vsub.f32 %v2197_v13, %v1053_v27  ;;  %1661 = vlog2.f32 %v999_v55 }
 0x363   :  { %v1652_v22 = vpop.eup %1651  ;;  %v1092_v12 = vsub.f32 %v2200_v14, %v1051_v7 }
 0x364   :  { %v1654_v2 = vpop.eup %1653  ;;  %1125 = vst [vmem:[%s2368_s4 + $0xb8] sm:$0xff] %v1093_v8  ;;  %v1057_v56 = vmul.f32 0.6931472, %v1652_v22  ;;  %v1005_v57 = vpop.xlane.xlu1 %1004 }
 0x365   :  { %1124 = vst [vmem:[%s2368_s4 + $0xb0] sm:$0xff] %v1092_v12  ;;  %v1055_v54 = vmul.f32 0.6931472, %v1654_v2  ;;  %1663 = vlog2.f32 %v1005_v57  ;;  %v1003_v63 = vpop.xlane.xlu0 %1002 }
 0x366   :  { %v1095_v13 = vsub.f32 %v2205_v48, %v1057_v56  ;;  %1665 = vlog2.f32 %v1003_v63 }
 0x367   :  { %v1656_v3 = vpop.eup %1655  ;;  %v1094_v14 = vsub.f32 %v2208_v21, %v1055_v54 }
 0x368   :  { %v1658_v28 = vpop.eup %1657  ;;  %1127 = vst [vmem:[%s2368_s4 + $0xc8] sm:$0xff] %v1095_v13  ;;  %v1061_v26 = vmul.f32 0.6931472, %v1656_v3 }
 0x369   :  { %1126 = vst [vmem:[%s2368_s4 + $0xc0] sm:$0xff] %v1094_v14  ;;  %v1059_v33 = vmul.f32 0.6931472, %v1658_v28 }
 0x36a   :  { %v1097_v34 = vsub.f32 %v2213_v58, %v1061_v26 }
 0x36b   :  { %v1660_v29 = vpop.eup %1659  ;;  %v1096_v48 = vsub.f32 %v2216_v59, %v1059_v33 }
 0x36c   :  { %v1662_v5 = vpop.eup %1661  ;;  %1129 = vst [vmem:[%s2368_s4 + $0xd8] sm:$0xff] %v1097_v34  ;;  %v1065_v21 = vmul.f32 0.6931472, %v1660_v29 }
 0x36d   :  { %1128 = vst [vmem:[%s2368_s4 + $0xd0] sm:$0xff] %v1096_v48  ;;  %v1063_v6 = vmul.f32 0.6931472, %v1662_v5 }
 0x36e   :  { %v1099_v10 = vsub.f32 %v2221_v4, %v1065_v21 }
 0x36f   :  { %v1664_v15 = vpop.eup %1663  ;;  %v1098_v45 = vsub.f32 %v2224_v9, %v1063_v6 }
 0x370   :  { %v1666_v58 = vpop.eup %1665  ;;  %1131 = vst [vmem:[%s2368_s4 + $0xe8] sm:$0xff] %v1099_v10  ;;  %v1069_v59 = vmul.f32 0.6931472, %v1664_v15 }
 0x371   :  { %1130 = vst [vmem:[%s2368_s4 + $0xe0] sm:$0xff] %v1098_v45  ;;  %v1067_v46 = vmul.f32 0.6931472, %v1666_v58 }
 0x372   :  { %v1101_v35 = vsub.f32 %v2229_v17, %v1069_v59 }
 0x373   :  { %v1100_v11 = vsub.f32 %v2232_v20, %v1067_v46 }
 0x374   :  { %1133 = vst [vmem:[%s2368_s4 + $0xf8] sm:$0xff] %v1101_v35 }
 0x375   :  { %1132 = vst [vmem:[%s2368_s4 + $0xf0] sm:$0xff] %v1100_v11 }

</bundles_post_ra>
